<compile_context>
chip_gen: v5e
topology: v5e:2x2
jax: 0.10.0
libtpu: 0.0.40
codegen_flags: <defaults>
</compile_context>

<pallas_src>
import jax
import jax.numpy as jnp
from jax import lax
from jax.experimental import pallas as pl
from jax.experimental.pallas import tpu as pltpu


# ---------------------------------------------------------------------------
# Pallas kernel: the whole 5-layer GIN stack.  grid = (num_layers,)
# ---------------------------------------------------------------------------
def _gin_stack_kernel(src_ref,      # [E, 1]   i32 (resident)
                      dst_ref,      # [1, E]   i32 (resident)
                      emb_ref,      # [1, D]   f32 (resident)
                      ea_ref,       # [E, 7]   f32 (resident)
                      invc_ref,     # [N, 1]   f32 (resident)
                      gmask_ref,    # [N, 1]   f32 (resident)
                      we_ref,       # [1, 7, D]  f32  (this layer)
                      w1_ref,       # [1, D, 2D] bf16 (this layer)
                      w2_ref,       # [1, 2D, D] bf16 (this layer)
                      out_ref):     # [N, D]   f32 (resident; layer carry + output)
    n, d = out_ref.shape
    e = ea_ref.shape[0]
    layer = pl.program_id(0)

    # --- WeirdEmbedding: every node index is forced to 0 -> weight row 0 ----
    @pl.when(layer == 0)
    def _():
        out_ref[...] = jnp.broadcast_to(emb_ref[...], (n, d))

    x = out_ref[...]                               # layer carry (VMEM resident)

    # --- edge encoder: edge_attr[E,7] @ w_edge[7,D] as 7 VPU multiply-adds ---
    ea = ea_ref[...]
    we = we_ref[0]
    edge_emb = ea[:, 0:1] * we[0:1, :]
    for k in range(1, 7):                          # static unroll, K=7
        edge_emb = edge_emb + ea[:, k:k + 1] * we[k:k + 1, :]

    # --- GINConv (mean aggregation) via one-hot matmuls on the MXU ----------
    # gather: msg_pre[i] = x[src[i]]  ==  onehot(src)[E,N] @ x[N,D]
    src_oh = jnp.where(
        lax.broadcasted_iota(jnp.int32, (e, n), 1) == src_ref[...],
        1.0, 0.0).astype(jnp.bfloat16)
    x_src = jnp.dot(src_oh, x.astype(jnp.bfloat16),
                    preferred_element_type=jnp.float32)        # [E, D] f32

    msg = jnp.maximum(x_src + edge_emb, 0.0)                   # relu message

    # scatter-add: agg[k] = sum_{i: dst[i]==k} msg[i]  ==  onehot(dst).T @ msg
    dst_oh_t = jnp.where(
        lax.broadcasted_iota(jnp.int32, (n, e), 0) == dst_ref[...],
        1.0, 0.0).astype(jnp.bfloat16)
    agg = jnp.dot(dst_oh_t, msg.astype(jnp.bfloat16),
                  preferred_element_type=jnp.float32) * invc_ref[...]   # mean

    # --- WeirdLinear(D -> 2D, no bias): bf16 operands, f32 accumulation -----
    h = jnp.dot(agg.astype(jnp.bfloat16), w1_ref[0],
                preferred_element_type=jnp.float32)            # [N, 2D] f32

    # --- WeirdGraphBatchNorm (training-mode ghost BN), centered statistics --
    g = gmask_ref[...]                                         # [N, 1]
    ng = jnp.sum(g, axis=0, keepdims=True)                     # [1, 1] #ghost
    ns = float(n) - ng                                         # [1, 1] #sample
    hg_sum = jnp.sum(h * g, axis=0, keepdims=True)
    ht_sum = jnp.sum(h, axis=0, keepdims=True)
    gh_mean = hg_sum / ng
    s_mean = (ht_sum - hg_sum) / ns
    dg = h - gh_mean
    ds = h - s_mean
    gh_var = jnp.sum(dg * dg * g, axis=0, keepdims=True) / ng
    s_var = jnp.sum(ds * ds * (1.0 - g), axis=0, keepdims=True) / ns
    mean = gh_mean + (s_mean - gh_mean) / (1.0 + ng)
    var = (ng * gh_var + s_var
           + (s_mean - mean) ** 2 * ng / (ng + 1.0)) / (ng + 1.0)
    tmp = (h - mean) * lax.rsqrt(var + 1e-5)
    # NOTE: the original module computes `tmp * weight + bias` and discards it,
    # so the un-affined `tmp` flows onward (reproduced here).
    # NOTE: like the PyTorch module, this assumes ng>0 and ns>0 (ghost batch
    # and at least one regular graph are present); no guard is added.

    # --- WeirdReLU + WeirdLinear(2D -> D, no bias) ---------------------------
    h2 = jnp.maximum(tmp, 0.0)
    out_ref[...] = jnp.dot(h2.astype(jnp.bfloat16), w2_ref[0],
                           preferred_element_type=jnp.float32)  # carry / output


# ---------------------------------------------------------------------------
# Wrapper: operand stacking, VMEM budget, pallas_call plumbing
# ---------------------------------------------------------------------------
def _vmem_budget_bytes(n, e, d, d2):
    f32, bf16, i32 = 4, 2, 4
    resident = (i32 * 2 * e + f32 * (d + 7 * e + 2 * n + n * d))
    per_layer = 2 * (f32 * 7 * d + bf16 * d * d2 + bf16 * d2 * d)   # dbl-buffered
    temps = (bf16 * 2 * e * n                       # one-hot tiles
             + f32 * (2 * e * d + 3 * n * d + 4 * n * d2))          # msg/h/BN tmp
    return resident + per_layer + temps


def gin_forward(params, edge_index, edge_attr, batch, ghost_samples=1,
                matmul_dtype=jnp.bfloat16):
    n = int(batch.shape[0])
    e = int(edge_index.shape[1])
    d = int(params["emb"].shape[1])
    d2 = 2 * d
    num_layers = len(params["layers"])

    src = edge_index[0].astype(jnp.int32)[:, None]          # [E, 1]
    dst = edge_index[1].astype(jnp.int32)[None, :]          # [1, E]

    # mean-aggregation normalizer (nodes with no incoming edges stay 0)
    counts = jnp.zeros((n,), jnp.float32).at[edge_index[1]].add(1.0)
    invc = (1.0 / jnp.clip(counts, 1.0, None))[:, None]     # [N, 1]

    # ghost-BN mask
    num_examples = jnp.max(batch)
    gmask = (batch > num_examples - ghost_samples).astype(jnp.float32)[:, None]

    emb = params["emb"].astype(jnp.float32)                                # [1, D]
    ea = edge_attr.astype(jnp.float32)                                     # [E, 7]
    w_edge = jnp.stack([lp["w_edge"] for lp in params["layers"]])          # [L,7,D]  f32
    w1 = jnp.stack([lp["w1"] for lp in params["layers"]]).astype(matmul_dtype)   # [L,D,2D]
    w2 = jnp.stack([lp["w2"] for lp in params["layers"]]).astype(matmul_dtype)   # [L,2D,D]

    # VMEM budget -> scoped limit (generation-aware cap)
    budget = _vmem_budget_bytes(n, e, d, d2)
    try:
        vmem_cap = int(pltpu.get_tpu_info().vmem_capacity_bytes)
    except Exception:
        vmem_cap = 64 * 1024 * 1024
    vmem_limit = int(min(max(2 * budget, 32 * 1024 * 1024),
                         vmem_cap - 8 * 1024 * 1024))

    # rough cost hint for the XLA scheduler
    flops = num_layers * (4 * e * n * d + 8 * n * d * d2 + 14 * e * d + 14 * n * d2)
    bytes_accessed = (4 * (2 * e + d + 7 * e + 2 * n + n * d)
                      + num_layers * (4 * 7 * d + 2 * d * d2 + 2 * d2 * d))

    grid_spec = pltpu.PrefetchScalarGridSpec(
        num_scalar_prefetch=0,
        grid=(num_layers,),
        in_specs=[
            pl.BlockSpec((e, 1), lambda l: (0, 0)),          # src      (resident)
            pl.BlockSpec((1, e), lambda l: (0, 0)),          # dst      (resident)
            pl.BlockSpec((1, d), lambda l: (0, 0)),          # emb      (resident)
            pl.BlockSpec((e, 7), lambda l: (0, 0)),          # edge_attr(resident)
            pl.BlockSpec((n, 1), lambda l: (0, 0)),          # invc     (resident)
            pl.BlockSpec((n, 1), lambda l: (0, 0)),          # gmask    (resident)
            pl.BlockSpec((1, 7, d), lambda l: (l, 0, 0)),    # w_edge[l]
            pl.BlockSpec((1, d, d2), lambda l: (l, 0, 0)),   # w1[l]
            pl.BlockSpec((1, d2, d), lambda l: (l, 0, 0)),   # w2[l]
        ],
        out_specs=pl.BlockSpec((n, d), lambda l: (0, 0)),    # carry + single writeback
    )

    return pl.pallas_call(
        _gin_stack_kernel,
        out_shape=jax.ShapeDtypeStruct((n, d), jnp.float32),
        grid_spec=grid_spec,
        compiler_params=pltpu.CompilerParams(
            dimension_semantics=("arbitrary",),              # layers are sequential
            vmem_limit_bytes=vmem_limit),
        cost_estimate=pl.CostEstimate(
            flops=int(flops),
            transcendentals=int(num_layers * d2),
            bytes_accessed=int(bytes_accessed)),
    )(src, dst, emb, ea, invc, gmask, w_edge, w1, w2)


# ---------------------------------------------------------------------------
# Parameter init (mirrors the PyTorch module's shapes; weights pre-transposed)
# ---------------------------------------------------------------------------
def init_params(key, emb_dim, num_layers, num_classes):
    ks = jax.random.split(key, 2 + 3 * num_layers)
    params = {"emb": jax.random.normal(ks[0], (1, emb_dim), jnp.float32) * 0.1}
    layers = []
    for l in range(num_layers):
        k0, k1, k2 = ks[1 + 3 * l: 4 + 3 * l]
        layers.append({
            "w_edge": jax.random.normal(k0, (7, emb_dim), jnp.float32) * 0.2,
            "w1": jax.random.normal(k1, (emb_dim, 2 * emb_dim), jnp.float32) * 0.1,
            "w2": jax.random.normal(k2, (2 * emb_dim, emb_dim), jnp.float32) * 0.1,
        })
    params["layers"] = layers
    # classifier (and GINConv.squish) exist in __init__ but are unused by forward
    params["classifier"] = jax.random.normal(
        ks[-1], (emb_dim, num_classes), jnp.float32) * 0.1
    return params


# ---------------------------------------------------------------------------
# Pure-JAX reference (module semantics) for correctness checking
# ---------------------------------------------------------------------------
def ref_forward(params, edge_index, edge_attr, batch, ghost_samples=1,
                matmul_dtype=None):
    n = batch.shape[0]
    d = params["emb"].shape[1]
    src, dst = edge_index[0], edge_index[1]
    counts = jnp.zeros((n,), jnp.float32).at[dst].add(1.0)
    inv_c = (1.0 / jnp.clip(counts, 1.0, None))[:, None]
    num_examples = jnp.max(batch)
    g = (batch > num_examples - ghost_samples).astype(jnp.float32)[:, None]
    s = 1.0 - g
    ng, ns = jnp.sum(g), jnp.sum(s)

    def q(v):   # mirror the kernel's bf16 rounding ahead of MXU ops
        if matmul_dtype is None:
            return v
        return v.astype(matmul_dtype).astype(jnp.float32)

    def mm(a, b):
        if matmul_dtype is not None:
            a = a.astype(matmul_dtype)
            b = b.astype(matmul_dtype)
        return jnp.dot(a, b, preferred_element_type=jnp.float32)

    x = jnp.broadcast_to(params["emb"][0], (n, d)).astype(jnp.float32)
    ea = edge_attr.astype(jnp.float32)
    for lp in params["layers"]:
        edge_emb = jnp.sum(ea[:, :, None] * lp["w_edge"][None], axis=1)
        msg = jnp.maximum(q(x)[src] + edge_emb, 0.0)
        agg = jnp.zeros((n, d), jnp.float32).at[dst].add(q(msg)) * inv_c
        h = mm(agg, lp["w1"])
        gh_mean = jnp.sum(h * g, 0, keepdims=True) / ng
        gh_var = jnp.sum(((h - gh_mean) ** 2) * g, 0, keepdims=True) / ng
        s_mean = jnp.sum(h * s, 0, keepdims=True) / ns
        s_var = jnp.sum(((h - s_mean) ** 2) * s, 0, keepdims=True) / ns
        mean = gh_mean + (s_mean - gh_mean) / (1.0 + ng)
        var = (ng * gh_var + s_var
               + (s_mean - mean) ** 2 * ng / (ng + 1.0)) / (ng + 1.0)
        tmp = (h - mean) / jnp.sqrt(var + 1e-5)
        x = mm(jnp.maximum(tmp, 0.0), lp["w2"])
    return x


if __name__ == "__main__":
    # small synthetic graph: 16 nodes / 3 graphs (last graph is the ghost batch),
    # 32 directed edges with 7-dim edge features, emb_dim=128 (lane-dense)
    EMB_DIM, NUM_LAYERS, NUM_CLASSES, GHOST = 128, 5, 13, 1
    N, E = 16, 32

    key = jax.random.PRNGKey(0)
    kp, ke, ka = jax.random.split(key, 3)

    params = init_params(kp, EMB_DIM, NUM_LAYERS, NUM_CLASSES)
    edge_index = jax.random.randint(ke, (2, E), 0, N, dtype=jnp.int32)
    edge_attr = jax.random.normal(ka, (E, 7), jnp.float32)
    batch = jnp.array([0] * 6 + [1] * 5 + [2] * 5, dtype=jnp.int32)

    out = gin_forward(params, edge_index, edge_attr, batch, ghost_samples=GHOST)
    out = jax.block_until_ready(out)
    assert out.shape == (N, EMB_DIM)
    assert bool(jnp.all(jnp.isfinite(out))), "non-finite output"

    # tight check: reference mirroring the kernel's bf16-operand casts
    ref_bf16 = ref_forward(params, edge_index, edge_attr, batch, GHOST,
                           matmul_dtype=jnp.bfloat16)
    assert jnp.allclose(out, ref_bf16, rtol=1e-2, atol=1e-2), \
        "mismatch vs bf16-matmul reference"

    # loose check vs pure-f32 module semantics (bounds bf16 quantization drift)
    ref_f32 = ref_forward(params, edge_index, edge_attr, batch, GHOST)
    rel = float(jnp.linalg.norm(out - ref_f32)
                / (jnp.linalg.norm(ref_f32) + 1e-12))
    assert rel < 0.1, f"relative error vs f32 reference too large: {rel}"

    print("KERNEL_OK")
</pallas_src>

<mosaic_0001>
module attributes {stable_mosaic.version = 11 : i64} {
  func.func @_gin_stack_kernel(%arg0: i32, %arg1: memref<32x1xi32, #tpu.memory_space<vmem>>, %arg2: memref<1x32xi32, #tpu.memory_space<vmem>>, %arg3: memref<1x128xf32, #tpu.memory_space<vmem>>, %arg4: memref<32x7xf32, #tpu.memory_space<vmem>>, %arg5: memref<16x1xf32, #tpu.memory_space<vmem>>, %arg6: memref<16x1xf32, #tpu.memory_space<vmem>>, %arg7: memref<1x7x128xf32, #tpu.memory_space<vmem>>, %arg8: memref<1x128x256xbf16, #tpu.memory_space<vmem>>, %arg9: memref<1x256x128xbf16, #tpu.memory_space<vmem>>, %arg10: memref<16x128xf32, #tpu.memory_space<vmem>>) attributes {dimension_semantics = [#tpu.dimension_semantics<arbitrary>], iteration_bounds = array<i64: 5>, scalar_prefetch = 0 : i64, scratch_operands = 0 : i64, tpu.core_type = #tpu.core_type<tc>, window_params = [{pipeline_mode = #tpu.pipeline_mode<synchronous>, transform_indices = @transform_0, window_bounds = array<i64: 32, 1>}, {pipeline_mode = #tpu.pipeline_mode<synchronous>, transform_indices = @transform_1, window_bounds = array<i64: 1, 32>}, {pipeline_mode = #tpu.pipeline_mode<synchronous>, transform_indices = @transform_2, window_bounds = array<i64: 1, 128>}, {pipeline_mode = #tpu.pipeline_mode<synchronous>, transform_indices = @transform_3, window_bounds = array<i64: 32, 7>}, {pipeline_mode = #tpu.pipeline_mode<synchronous>, transform_indices = @transform_4, window_bounds = array<i64: 16, 1>}, {pipeline_mode = #tpu.pipeline_mode<synchronous>, transform_indices = @transform_5, window_bounds = array<i64: 16, 1>}, {transform_indices = @transform_6, window_bounds = array<i64: 1, 7, 128>}, {transform_indices = @transform_7, window_bounds = array<i64: 1, 128, 256>}, {transform_indices = @transform_8, window_bounds = array<i64: 1, 256, 128>}, {pipeline_mode = #tpu.pipeline_mode<synchronous>, transform_indices = @transform_9, window_bounds = array<i64: 16, 128>}]} {
    %c0_i32 = arith.constant 0 : i32
    %0 = arith.cmpi eq, %arg0, %c0_i32 : i32
    %1 = arith.extui %0 : i1 to i32
    %c0_i32_0 = arith.constant 0 : i32
    %2 = arith.cmpi ne, %1, %c0_i32_0 : i32
    scf.if %2 {
      %c0_43 = arith.constant 0 : index
      %c0_44 = arith.constant 0 : index
      %150 = vector.load %arg3[%c0_43, %c0_44] : memref<1x128xf32, #tpu.memory_space<vmem>>, vector<1x128xf32>
      %151 = vector.shape_cast %150 : vector<1x128xf32> to vector<1x128xf32>
      %152 = vector.broadcast %151 : vector<1x128xf32> to vector<16x128xf32>
      %c0_45 = arith.constant 0 : index
      %c0_46 = arith.constant 0 : index
      %153 = vector.load %arg10[%c0_45, %c0_46] : memref<16x128xf32, #tpu.memory_space<vmem>>, vector<16x128xf32>
      tpu.vector_store %arg10[%c0_45, %c0_46], %152 {strides = array<i32>} : memref<16x128xf32, #tpu.memory_space<vmem>>, vector<16x128xf32>,
    } else {
    }
    %c0 = arith.constant 0 : index
    %c0_1 = arith.constant 0 : index
    %3 = vector.load %arg10[%c0, %c0_1] : memref<16x128xf32, #tpu.memory_space<vmem>>, vector<16x128xf32>
    %c0_2 = arith.constant 0 : index
    %c0_3 = arith.constant 0 : index
    %4 = vector.load %arg4[%c0_2, %c0_3] : memref<32x7xf32, #tpu.memory_space<vmem>>, vector<32x7xf32>
    %c0_4 = arith.constant 0 : index
    %c0_5 = arith.constant 0 : index
    %c0_6 = arith.constant 0 : index
    %5 = vector.load %arg7[%c0_4, %c0_5, %c0_6] : memref<1x7x128xf32, #tpu.memory_space<vmem>>, vector<1x7x128xf32>
    %6 = vector.shape_cast %5 : vector<1x7x128xf32> to vector<7x128xf32>
    %7 = vector.extract_strided_slice %4 {offsets = [0, 0], sizes = [32, 1], strides = [1, 1]} : vector<32x7xf32> to vector<32x1xf32>
    %8 = vector.extract_strided_slice %6 {offsets = [0, 0], sizes = [1, 128], strides = [1, 1]} : vector<7x128xf32> to vector<1x128xf32>
    %9 = vector.broadcast %7 : vector<32x1xf32> to vector<32x128xf32>
    %10 = vector.broadcast %8 : vector<1x128xf32> to vector<32x128xf32>
    %11 = arith.mulf %9, %10 : vector<32x128xf32>
    %12 = vector.extract_strided_slice %4 {offsets = [0, 1], sizes = [32, 1], strides = [1, 1]} : vector<32x7xf32> to vector<32x1xf32>
    %13 = vector.extract_strided_slice %6 {offsets = [1, 0], sizes = [1, 128], strides = [1, 1]} : vector<7x128xf32> to vector<1x128xf32>
    %14 = vector.broadcast %12 : vector<32x1xf32> to vector<32x128xf32>
    %15 = vector.broadcast %13 : vector<1x128xf32> to vector<32x128xf32>
    %16 = arith.mulf %14, %15 : vector<32x128xf32>
    %17 = arith.addf %11, %16 : vector<32x128xf32>
    %18 = vector.extract_strided_slice %4 {offsets = [0, 2], sizes = [32, 1], strides = [1, 1]} : vector<32x7xf32> to vector<32x1xf32>
    %19 = vector.extract_strided_slice %6 {offsets = [2, 0], sizes = [1, 128], strides = [1, 1]} : vector<7x128xf32> to vector<1x128xf32>
    %20 = vector.broadcast %18 : vector<32x1xf32> to vector<32x128xf32>
    %21 = vector.broadcast %19 : vector<1x128xf32> to vector<32x128xf32>
    %22 = arith.mulf %20, %21 : vector<32x128xf32>
    %23 = arith.addf %17, %22 : vector<32x128xf32>
    %24 = vector.extract_strided_slice %4 {offsets = [0, 3], sizes = [32, 1], strides = [1, 1]} : vector<32x7xf32> to vector<32x1xf32>
    %25 = vector.extract_strided_slice %6 {offsets = [3, 0], sizes = [1, 128], strides = [1, 1]} : vector<7x128xf32> to vector<1x128xf32>
    %26 = vector.broadcast %24 : vector<32x1xf32> to vector<32x128xf32>
    %27 = vector.broadcast %25 : vector<1x128xf32> to vector<32x128xf32>
    %28 = arith.mulf %26, %27 : vector<32x128xf32>
    %29 = arith.addf %23, %28 : vector<32x128xf32>
    %30 = vector.extract_strided_slice %4 {offsets = [0, 4], sizes = [32, 1], strides = [1, 1]} : vector<32x7xf32> to vector<32x1xf32>
    %31 = vector.extract_strided_slice %6 {offsets = [4, 0], sizes = [1, 128], strides = [1, 1]} : vector<7x128xf32> to vector<1x128xf32>
    %32 = vector.broadcast %30 : vector<32x1xf32> to vector<32x128xf32>
    %33 = vector.broadcast %31 : vector<1x128xf32> to vector<32x128xf32>
    %34 = arith.mulf %32, %33 : vector<32x128xf32>
    %35 = arith.addf %29, %34 : vector<32x128xf32>
    %36 = vector.extract_strided_slice %4 {offsets = [0, 5], sizes = [32, 1], strides = [1, 1]} : vector<32x7xf32> to vector<32x1xf32>
    %37 = vector.extract_strided_slice %6 {offsets = [5, 0], sizes = [1, 128], strides = [1, 1]} : vector<7x128xf32> to vector<1x128xf32>
    %38 = vector.broadcast %36 : vector<32x1xf32> to vector<32x128xf32>
    %39 = vector.broadcast %37 : vector<1x128xf32> to vector<32x128xf32>
    %40 = arith.mulf %38, %39 : vector<32x128xf32>
    %41 = arith.addf %35, %40 : vector<32x128xf32>
    %42 = vector.extract_strided_slice %4 {offsets = [0, 6], sizes = [32, 1], strides = [1, 1]} : vector<32x7xf32> to vector<32x1xf32>
    %43 = vector.extract_strided_slice %6 {offsets = [6, 0], sizes = [1, 128], strides = [1, 1]} : vector<7x128xf32> to vector<1x128xf32>
    %44 = vector.broadcast %42 : vector<32x1xf32> to vector<32x128xf32>
    %45 = vector.broadcast %43 : vector<1x128xf32> to vector<32x128xf32>
    %46 = arith.mulf %44, %45 : vector<32x128xf32>
    %47 = arith.addf %41, %46 : vector<32x128xf32>
    %48 = tpu.iota {dimensions = array<i32: 1>} : vector<32x16xi32>
    %c0_7 = arith.constant 0 : index
    %c0_8 = arith.constant 0 : index
    %49 = vector.load %arg1[%c0_7, %c0_8] : memref<32x1xi32, #tpu.memory_space<vmem>>, vector<32x1xi32>
    %50 = vector.broadcast %49 : vector<32x1xi32> to vector<32x16xi32>
    %51 = arith.cmpi eq, %48, %50 : vector<32x16xi32>
    %cst = arith.constant 1.000000e+00 : f32
    %cst_9 = arith.constant 0.000000e+00 : f32
    %52 = vector.broadcast %cst : f32 to vector<32x16xf32>
    %53 = vector.broadcast %cst_9 : f32 to vector<32x16xf32>
    %54 = arith.select %51, %52, %53 : vector<32x16xi1>, vector<32x16xf32>
    %55 = arith.truncf %54 : vector<32x16xf32> to vector<32x16xbf16>
    %56 = arith.truncf %3 : vector<16x128xf32> to vector<16x128xbf16>
    %cst_10 = arith.constant dense<0.000000e+00> : vector<32x128xf32>
    %57 = tpu.matmul %55, %56, %cst_10 {dimension_numbers = #tpu.dot_dimension_numbers<[1], [0], [0], [1], [0, 0, 1, 1], [], []>} : vector<32x16xbf16>, vector<16x128xbf16>, vector<32x128xf32> -> vector<32x128xf32>
    %58 = arith.addf %57, %47 : vector<32x128xf32>
    %cst_11 = arith.constant 0.000000e+00 : f32
    %59 = vector.broadcast %cst_11 : f32 to vector<32x128xf32>
    %60 = arith.maximumf %58, %59 : vector<32x128xf32>
    %61 = tpu.iota {dimensions = array<i32: 0>} : vector<16x32xi32>
    %c0_12 = arith.constant 0 : index
    %c0_13 = arith.constant 0 : index
    %62 = vector.load %arg2[%c0_12, %c0_13] : memref<1x32xi32, #tpu.memory_space<vmem>>, vector<1x32xi32>
    %63 = vector.broadcast %62 : vector<1x32xi32> to vector<16x32xi32>
    %64 = arith.cmpi eq, %61, %63 : vector<16x32xi32>
    %cst_14 = arith.constant 1.000000e+00 : f32
    %cst_15 = arith.constant 0.000000e+00 : f32
    %65 = vector.broadcast %cst_14 : f32 to vector<16x32xf32>
    %66 = vector.broadcast %cst_15 : f32 to vector<16x32xf32>
    %67 = arith.select %64, %65, %66 : vector<16x32xi1>, vector<16x32xf32>
    %68 = arith.truncf %67 : vector<16x32xf32> to vector<16x32xbf16>
    %69 = arith.truncf %60 : vector<32x128xf32> to vector<32x128xbf16>
    %cst_16 = arith.constant dense<0.000000e+00> : vector<16x128xf32>
    %70 = tpu.matmul %68, %69, %cst_16 {dimension_numbers = #tpu.dot_dimension_numbers<[1], [0], [0], [1], [0, 0, 1, 1], [], []>} : vector<16x32xbf16>, vector<32x128xbf16>, vector<16x128xf32> -> vector<16x128xf32>
    %c0_17 = arith.constant 0 : index
    %c0_18 = arith.constant 0 : index
    %71 = vector.load %arg5[%c0_17, %c0_18] : memref<16x1xf32, #tpu.memory_space<vmem>>, vector<16x1xf32>
    %72 = vector.broadcast %71 : vector<16x1xf32> to vector<16x128xf32>
    %73 = arith.mulf %70, %72 : vector<16x128xf32>
    %74 = arith.truncf %73 : vector<16x128xf32> to vector<16x128xbf16>
    %c0_19 = arith.constant 0 : index
    %c0_20 = arith.constant 0 : index
    %c0_21 = arith.constant 0 : index
    %75 = vector.load %arg8[%c0_19, %c0_20, %c0_21] : memref<1x128x256xbf16, #tpu.memory_space<vmem>>, vector<1x128x256xbf16>
    %76 = vector.shape_cast %75 : vector<1x128x256xbf16> to vector<128x256xbf16>
    %cst_22 = arith.constant dense<0.000000e+00> : vector<16x256xf32>
    %77 = tpu.matmul %74, %76, %cst_22 {dimension_numbers = #tpu.dot_dimension_numbers<[1], [0], [0], [1], [0, 0, 1, 1], [], []>} : vector<16x128xbf16>, vector<128x256xbf16>, vector<16x256xf32> -> vector<16x256xf32>
    %c0_23 = arith.constant 0 : index
    %c0_24 = arith.constant 0 : index
    %78 = vector.load %arg6[%c0_23, %c0_24] : memref<16x1xf32, #tpu.memory_space<vmem>>, vector<16x1xf32>
    %cst_25 = arith.constant dense<0.000000e+00> : vector<1xf32>
    %79 = vector.multi_reduction <add>, %78, %cst_25 [0] : vector<16x1xf32> to vector<1xf32>
    %80 = vector.shape_cast %79 : vector<1xf32> to vector<1x1xf32>
    %cst_26 = arith.constant 1.600000e+01 : f32
    %81 = vector.broadcast %cst_26 : f32 to vector<1x1xf32>
    %82 = arith.subf %81, %80 : vector<1x1xf32>
    %83 = vector.broadcast %78 : vector<16x1xf32> to vector<16x256xf32>
    %84 = arith.mulf %77, %83 : vector<16x256xf32>
    %cst_27 = arith.constant dense<0.000000e+00> : vector<256xf32>
    %85 = vector.multi_reduction <add>, %84, %cst_27 [0] : vector<16x256xf32> to vector<256xf32>
    %86 = vector.shape_cast %85 : vector<256xf32> to vector<1x256xf32>
    %cst_28 = arith.constant dense<0.000000e+00> : vector<256xf32>
    %87 = vector.multi_reduction <add>, %77, %cst_28 [0] : vector<16x256xf32> to vector<256xf32>
    %88 = vector.shape_cast %87 : vector<256xf32> to vector<1x256xf32>
    %89 = vector.broadcast %80 : vector<1x1xf32> to vector<1x256xf32>
    %90 = arith.divf %86, %89 : vector<1x256xf32>
    %91 = arith.subf %88, %86 : vector<1x256xf32>
    %92 = vector.broadcast %82 : vector<1x1xf32> to vector<1x256xf32>
    %93 = arith.divf %91, %92 : vector<1x256xf32>
    %94 = vector.broadcast %90 : vector<1x256xf32> to vector<16x256xf32>
    %95 = arith.subf %77, %94 : vector<16x256xf32>
    %96 = vector.broadcast %93 : vector<1x256xf32> to vector<16x256xf32>
    %97 = arith.subf %77, %96 : vector<16x256xf32>
    %98 = arith.mulf %95, %95 : vector<16x256xf32>
    %99 = vector.broadcast %78 : vector<16x1xf32> to vector<16x256xf32>
    %100 = arith.mulf %98, %99 : vector<16x256xf32>
    %cst_29 = arith.constant dense<0.000000e+00> : vector<256xf32>
    %101 = vector.multi_reduction <add>, %100, %cst_29 [0] : vector<16x256xf32> to vector<256xf32>
    %102 = vector.shape_cast %101 : vector<256xf32> to vector<1x256xf32>
    %103 = vector.broadcast %80 : vector<1x1xf32> to vector<1x256xf32>
    %104 = arith.divf %102, %103 : vector<1x256xf32>
    %105 = arith.mulf %97, %97 : vector<16x256xf32>
    %cst_30 = arith.constant 1.000000e+00 : f32
    %106 = vector.broadcast %cst_30 : f32 to vector<16x1xf32>
    %107 = arith.subf %106, %78 : vector<16x1xf32>
    %108 = vector.broadcast %107 : vector<16x1xf32> to vector<16x256xf32>
    %109 = arith.mulf %105, %108 : vector<16x256xf32>
    %cst_31 = arith.constant dense<0.000000e+00> : vector<256xf32>
    %110 = vector.multi_reduction <add>, %109, %cst_31 [0] : vector<16x256xf32> to vector<256xf32>
    %111 = vector.shape_cast %110 : vector<256xf32> to vector<1x256xf32>
    %112 = vector.broadcast %82 : vector<1x1xf32> to vector<1x256xf32>
    %113 = arith.divf %111, %112 : vector<1x256xf32>
    %114 = arith.subf %93, %90 : vector<1x256xf32>
    %cst_32 = arith.constant 1.000000e+00 : f32
    %115 = vector.broadcast %cst_32 : f32 to vector<1x1xf32>
    %116 = arith.addf %115, %80 : vector<1x1xf32>
    %117 = vector.broadcast %116 : vector<1x1xf32> to vector<1x256xf32>
    %118 = arith.divf %114, %117 : vector<1x256xf32>
    %119 = arith.addf %90, %118 : vector<1x256xf32>
    %120 = vector.broadcast %80 : vector<1x1xf32> to vector<1x256xf32>
    %121 = arith.mulf %120, %104 : vector<1x256xf32>
    %122 = arith.addf %121, %113 : vector<1x256xf32>
    %123 = arith.subf %93, %119 : vector<1x256xf32>
    %124 = arith.mulf %123, %123 : vector<1x256xf32>
    %125 = vector.broadcast %80 : vector<1x1xf32> to vector<1x256xf32>
    %126 = arith.mulf %124, %125 : vector<1x256xf32>
    %cst_33 = arith.constant 1.000000e+00 : f32
    %127 = vector.broadcast %cst_33 : f32 to vector<1x1xf32>
    %128 = arith.addf %80, %127 : vector<1x1xf32>
    %129 = vector.broadcast %128 : vector<1x1xf32> to vector<1x256xf32>
    %130 = arith.divf %126, %129 : vector<1x256xf32>
    %131 = arith.addf %122, %130 : vector<1x256xf32>
    %cst_34 = arith.constant 1.000000e+00 : f32
    %132 = vector.broadcast %cst_34 : f32 to vector<1x1xf32>
    %133 = arith.addf %80, %132 : vector<1x1xf32>
    %134 = vector.broadcast %133 : vector<1x1xf32> to vector<1x256xf32>
    %135 = arith.divf %131, %134 : vector<1x256xf32>
    %136 = vector.broadcast %119 : vector<1x256xf32> to vector<16x256xf32>
    %137 = arith.subf %77, %136 : vector<16x256xf32>
    %cst_35 = arith.constant 9.99999974E-6 : f32
    %138 = vector.broadcast %cst_35 : f32 to vector<1x256xf32>
    %139 = arith.addf %135, %138 : vector<1x256xf32>
    %140 = math.rsqrt %139 : vector<1x256xf32>
    %141 = vector.broadcast %140 : vector<1x256xf32> to vector<16x256xf32>
    %142 = arith.mulf %137, %141 : vector<16x256xf32>
    %cst_36 = arith.constant 0.000000e+00 : f32
    %143 = vector.broadcast %cst_36 : f32 to vector<16x256xf32>
    %144 = arith.maximumf %142, %143 : vector<16x256xf32>
    %145 = arith.truncf %144 : vector<16x256xf32> to vector<16x256xbf16>
    %c0_37 = arith.constant 0 : index
    %c0_38 = arith.constant 0 : index
    %c0_39 = arith.constant 0 : index
    %146 = vector.load %arg9[%c0_37, %c0_38, %c0_39] : memref<1x256x128xbf16, #tpu.memory_space<vmem>>, vector<1x256x128xbf16>
    %147 = vector.shape_cast %146 : vector<1x256x128xbf16> to vector<256x128xbf16>
    %cst_40 = arith.constant dense<0.000000e+00> : vector<16x128xf32>
    %148 = tpu.matmul %145, %147, %cst_40 {dimension_numbers = #tpu.dot_dimension_numbers<[1], [0], [0], [1], [0, 0, 1, 1], [], []>} : vector<16x256xbf16>, vector<256x128xbf16>, vector<16x128xf32> -> vector<16x128xf32>
    %c0_41 = arith.constant 0 : index
    %c0_42 = arith.constant 0 : index
    %149 = vector.load %arg10[%c0_41, %c0_42] : memref<16x128xf32, #tpu.memory_space<vmem>>, vector<16x128xf32>
    tpu.vector_store %arg10[%c0_41, %c0_42], %148 {strides = array<i32>} : memref<16x128xf32, #tpu.memory_space<vmem>>, vector<16x128xf32>,
    return
  }
  func.func @transform_0(%arg0: i32) -> (i32, i32) {
    %c0_i32 = arith.constant 0 : i32
    %c0_i32_0 = arith.constant 0 : i32
    %c0_i32_1 = arith.constant 0 : i32
    return %c0_i32, %c0_i32_0 : i32, i32
  }
  func.func @transform_1(%arg0: i32) -> (i32, i32) {
    %c0_i32 = arith.constant 0 : i32
    %c0_i32_0 = arith.constant 0 : i32
    %c0_i32_1 = arith.constant 0 : i32
    return %c0_i32, %c0_i32_0 : i32, i32
  }
  func.func @transform_2(%arg0: i32) -> (i32, i32) {
    %c0_i32 = arith.constant 0 : i32
    %c0_i32_0 = arith.constant 0 : i32
    %c0_i32_1 = arith.constant 0 : i32
    return %c0_i32, %c0_i32_0 : i32, i32
  }
  func.func @transform_3(%arg0: i32) -> (i32, i32) {
    %c0_i32 = arith.constant 0 : i32
    %c0_i32_0 = arith.constant 0 : i32
    %c0_i32_1 = arith.constant 0 : i32
    return %c0_i32, %c0_i32_0 : i32, i32
  }
  func.func @transform_4(%arg0: i32) -> (i32, i32) {
    %c0_i32 = arith.constant 0 : i32
    %c0_i32_0 = arith.constant 0 : i32
    %c0_i32_1 = arith.constant 0 : i32
    return %c0_i32, %c0_i32_0 : i32, i32
  }
  func.func @transform_5(%arg0: i32) -> (i32, i32) {
    %c0_i32 = arith.constant 0 : i32
    %c0_i32_0 = arith.constant 0 : i32
    %c0_i32_1 = arith.constant 0 : i32
    return %c0_i32, %c0_i32_0 : i32, i32
  }
  func.func @transform_6(%arg0: i32) -> (i32, i32, i32) {
    %c0_i32 = arith.constant 0 : i32
    %c0_i32_0 = arith.constant 0 : i32
    %c0_i32_1 = arith.constant 0 : i32
    return %arg0, %c0_i32, %c0_i32_0 : i32, i32, i32
  }
  func.func @transform_7(%arg0: i32) -> (i32, i32, i32) {
    %c0_i32 = arith.constant 0 : i32
    %c0_i32_0 = arith.constant 0 : i32
    %c0_i32_1 = arith.constant 0 : i32
    return %arg0, %c0_i32, %c0_i32_0 : i32, i32, i32
  }
  func.func @transform_8(%arg0: i32) -> (i32, i32, i32) {
    %c0_i32 = arith.constant 0 : i32
    %c0_i32_0 = arith.constant 0 : i32
    %c0_i32_1 = arith.constant 0 : i32
    return %arg0, %c0_i32, %c0_i32_0 : i32, i32, i32
  }
  func.func @transform_9(%arg0: i32) -> (i32, i32) {
    %c0_i32 = arith.constant 0 : i32
    %c0_i32_0 = arith.constant 0 : i32
    %c0_i32_1 = arith.constant 0 : i32
    return %c0_i32, %c0_i32_0 : i32, i32
  }
}

</mosaic_0001>

<bundles_post_ra>
// kernel: tpu_custom_call.1
= control target key start
LH: loop header
LB: loop body
LE: loop exit
PB: predicated region body
PF: predicated region fallthrough
CT: control target
= control target key end

     0   :  { %s2255_s0 = inlined_call_operand.vmem [shape: s32[32,1], index: 0, kind: input, shape index: {}]   ;;  %s2256_s1 = inlined_call_operand.vmem [shape: s32[1,32], index: 1, kind: input, shape index: {}]   ;;  %s2257_s2 = inlined_call_operand.vmem [shape: f32[1,128], index: 2, kind: input, shape index: {}]   ;;  %s2258_s3 = inlined_call_operand.vmem [shape: f32[32,7], index: 3, kind: input, shape index: {}]   ;;  %s2259_s4 = inlined_call_operand.vmem [shape: f32[16,1], index: 4, kind: input, shape index: {}]   ;;  %s2260_s5 = inlined_call_operand.vmem [shape: f32[16,1], index: 5, kind: input, shape index: {}]   ;;  %s2261_s6 = inlined_call_operand.vmem [shape: f32[5,7,128], index: 6, kind: input, shape index: {}]   ;;  %s2262_s7 = inlined_call_operand.hbm [shape: bf16[5,128,256], index: 7, kind: input, shape index: {}]   ;;  %s2263_s8 = inlined_call_operand.hbm [shape: bf16[5,256,128], index: 8, kind: input, shape index: {}]   ;;  %s2264_s9 = inlined_call_operand.hbm [shape: f32[16,128], index: 9, kind: output, shape index: {}]  }
   0x1   :  { %2270 = sst [smem:[#allocation14_spill]] %s2262_s7 }
   0x2   :  { %14 = vsyncpa [#allocation3], 0 }
   0x3   :  { %16 = vsyncpa [#allocation3 + $0x1], 0 }
   0x4   :  { %17 = vsyncpa [#allocation6], 0 }
   0x5   :  { %19 = vsyncpa [#allocation6 + $0x1], 0 }
   0x6   :  { %20 = vsyncpa [#allocation4], 0  ;;  %s1808_s30 = smov 0   ;;  %s1810_s10 = smov 0  }
   0x7   :  { %s1812_s11 = smov 0   ;;  %s1814_s12 = smov 0  }
   0x8 LB: > { %2271 = sst [smem:[#allocation11_spill]] %s1737_s11  ;;  %s1827_s13 = sadd.s32 4294967295, %s1741_s12   ;;  %s1741_s12 = sphi %s1814_s12, %s2293_s12   ;;  %s1737_s11 = sphi %s1812_s11, %s2295_s11   ;;  %s1733_s10 = sphi %s1810_s10, %s2297_s10   ;;  %s1729_s30 = sphi %s1808_s30, %s2296_s30  }
   0x9   : > { %s1830_s14 = sadd.s32 1, %s1741_s12   ;;  %s185_s16 = sadd.s32 1, %s1737_s11 }
   0xa   : > { %2272 = sst [smem:[#allocation12_spill]] %s1830_s14  ;;  %s182_s15 = ssub.s32 %s1741_s12, %s1830_s14 }
   0xb   : > { %p183_p0 = scmp.eq.s32.totalorder %s182_s15, 0  ;;  %p192_p1 = scmp.ne.s32.totalorder %s1737_s11, %s1733_s10 }
   0xc   : > { %p193_p2 = scmp.eq.s32.totalorder %s1741_s12, 0  ;;  %p198_p3 = scmp.ne.s32.totalorder %s1733_s10, %s1729_s30 }
   0xd   : > { %s1840_s17 = scalar_select %p183_p0, %s1737_s11, %s185_s16  }
   0xe   : > { %p1842_p4 = por %p193_p2, %p192_p1  ;;  %p199_p5 = scmp.eq.s32.totalorder %s1827_s13, 0 }
   0xf   : > { %2273 = sst [smem:[#allocation13_spill]] %s1840_s17  ;;  %p1518_p6 = scmp.lt.s32.totalorder %s1741_s12, 5 }
  0x10   : > { %p1848_p7 = por %p199_p5, %p198_p3  ;;  %s1853_s20 = sand.u32 1, %s1737_s11  }
  0x11   : > { %s2265_s21 = sshll.u32 %s1853_s20, 7  ;;  %s2266_s22 = sshll.u32 %s1741_s12, 7 }
  0x12   : > { %s2276_s7 = sld [smem:[#allocation14_spill]]  ;;  %s298_s26 = scalar_lea.vmem [#allocation2], %s2265_s21 }
  0x13   : > { %s306_s27 = sshll.u32 %s298_s26, 4  ;;  %p1866_p8 = pnand %p1518_p6, %p1842_p4  ;;  %s307_s27 = int_to_ptr.vmem [resolvable:$true] %s306_s27 }
  0x14   : > { %p1329_p9 = scmp.ge.s32.totalorder %s1741_s12, 1  ;;  %s295_s30 = scalar_lea.sflag [#allocation3], %s1853_s20 }
  0x15   : > { %p1615_p11 = pneg %p1866_p8 }
  0x18   : > { %s303_s25 = scalar_lea.hbm %s2276_s7, %s2266_s22  ;;  %s1618_s24 = scalar_lea.hbm %s2276_s7, 640 }
  0x19   : > { %s304_s28 = sshll.u32 %s303_s25, 4  ;;  %s305_s28 = int_to_ptr.hbm [resolvable:$true] %s304_s28 }
  0x1a   : > { %s1611_s15 = sshra.s32 %s305_s28, 4  ;;  %s1612_s15 = int_to_ptr.hbm [resolvable:$true] %s1611_s15 }
  0x1b   : > { %s1613_s16 = scalar_lea.hbm %s1612_s15, 128  ;;  %p1619_p0 = scmp.lt.s32.totalorder %s1612_s15, %s2276_s7 }
  0x1c   : > { %p1614_p10 = scmp.ne.s32.totalorder %s1612_s15, %s1613_s16  ;;  %p1620_p1 = scmp.lt.s32.totalorder %s1618_s24, %s1613_s16 }
  0x1e   : > { %p1616_p12 = pnand %p1615_p11, %p1614_p10  ;;  %p1621_p2 = por %p1620_p1, %p1619_p0 }
  0x20   : > { %p1617_p13 = pneg %p1616_p12 }
  0x22   : > { %p1622_p3 = pnand %p1621_p2, %p1617_p13 }
  0x24   : > { %1625 = shalt.err (!%p1622_p3)
}
  0x25   : > { %s1743_s21 = smov 128   ;;  %s1744_s22 = smov 8  }
  0x26   : > { %1514 = dma.hbm_to_vmem [thread:$0]  (!%p1866_p8), %s305_s28, 2048, %s307_s27, %s295_s30, %s1743_s21, %s1743_s21, %s1744_s22  }
  0x27   : > { %p336_p4 = scmp.lt.s32.totalorder %s1741_s12, 6  ;;  %s2278_s23 = sshll.u32 %s1741_s12, 7 }
  0x28   : > { %s325_s15 = scalar_lea.hbm %s2263_s8, %s2278_s23  ;;  %s2280_s26 = sshll.u32 %s1853_s20, 7 }
  0x29   : > { %p1893_p5 = pnand %p1329_p9, %p336_p4  ;;  %s326_s24 = sshll.u32 %s325_s15, 4  ;;  %s327_s24 = int_to_ptr.hbm [resolvable:$true] %s326_s24 }
  0x2a   : > { %s320_s7 = scalar_lea.vmem [#allocation5], %s2280_s26  ;;  %s317_s11 = scalar_lea.sflag [#allocation6], %s1853_s20 }
  0x2b   : > { %s328_s17 = sshll.u32 %s320_s7, 4  ;;  %s1641_s14 = sshra.s32 %s327_s24, 4  ;;  %s329_s17 = int_to_ptr.vmem [resolvable:$true] %s328_s17  ;;  %s1642_s14 = int_to_ptr.hbm [resolvable:$true] %s1641_s14 }
  0x2c   : > { %s1643_s21 = scalar_lea.hbm %s1642_s14, 128  ;;  %s1648_s27 = scalar_lea.hbm %s2263_s8, 640 }
  0x2d   : > { %p1644_p6 = scmp.ne.s32.totalorder %s1642_s14, %s1643_s21  ;;  %p1649_p9 = scmp.lt.s32.totalorder %s1642_s14, %s2263_s8 }
  0x2e   : > { %p1650_p13 = scmp.lt.s32.totalorder %s1648_s27, %s1643_s21 }
  0x2f   : > { %p1646_p10 = pnand %p1644_p6, %p1615_p11 }
  0x30   : > { %p1651_p0 = por %p1650_p13, %p1649_p9 }
  0x31   : > { %p1647_p12 = pneg %p1646_p10 }
  0x33   : > { %p1652_p1 = pnand %p1651_p0, %p1647_p12 }
  0x35   : > { %1655 = shalt.err (!%p1652_p1)
}
  0x36   : > { %s1745_s7 = smov 64   ;;  %s1746_s20 = smov 4  }
  0x37   : > { %1517 = dma.hbm_to_vmem [thread:$0]  (!%p1866_p8), %s327_s24, 2048, %s329_s17, %s317_s11, %s1745_s7, %s1745_s7, %s1746_s20  }
  0x38   : > { %340 = sbr.rel (%p1893_p5) target bundleno = 862 (0x35e), region = 56  ;;  %s342_s23 = sand.u32 (!%p1893_p5), 1, %s1733_s10  }
  0x39   : > { %s1330_s18 = sshll.u32 (!%p1893_p5), %s342_s23, 7  ;;  %s343_s25 = scalar_lea.sflag (!%p1893_p5), [#allocation3], %s342_s23 }
  0x3a   : > { %s1914_s15 = scalar_lea.vmem (!%p1893_p5), [#allocation2], %s1330_s18 }
  0x3d   : > { %1716 = dma.done.wait (%p1848_p7), %s343_s25, 2048  }
  0x3e   : > { %1718 = vsyncadd (%p1848_p7), %s343_s25, 4294965248  ;;  %s353_s14 = scalar_lea.sflag [#allocation6], %s342_s23  ;;  %s1920_s26 = scalar_lea.vmem [#allocation5], %s1330_s18 }
  0x3f   : > { %1720 = dma.done.wait (%p1848_p7), %s353_s14, 2048  }
  0x40   : > { %1722 = vsyncadd (%p1848_p7), %s353_s14, 4294965248  ;;  %p396_p8 = scmp.lt.s32.totalorder %s1827_s13, 4  ;;  %p1333_p11 = scmp.ne.s32.totalorder %s1827_s13, 0 }
  0x42   : > { %s397_s11 = scalar_select %p396_p8, %s1827_s13, 4 }
  0x43   : > { %404 = sbr.rel (%p1333_p11) target bundleno = 75 (0x4b), region = 68 }
  0x44   : > { %s1332_s17 = sshll.u32 %s397_s11, 3 }
  0x45   : > { %s1931_s24 = scalar_lea.vmem %s2261_s6, %s1332_s17 }
  0x48   : > { %v1568_v0 = vld [vmem:[%s2257_s2] ss:$0 sm:$0xff] }
  0x49   : > { %409 = vst [vmem:[#allocation7] sm:$0xff] %v1568_v0 }
  0x4a   : > { %410 = vst [vmem:[#allocation7 + $0x8] sm:$0xff] %v1568_v0 }
  0x4b PF: > { %v597_v1 = vld [vmem:[%s2255_s0 + $0x10] sm:$0xff]  ;;  %v595_v2 = vld [vmem:[%s2255_s0] sm:$0xff]  ;;  %v1747_v3 = vmov 0   ;;  %v598_v5 = vld [vmem:[%s2255_s0 + $0x18] sm:$0xff]  ;;  %v1748_v8 = vmov 1   ;;  %v1749_v9 = vmov 2   ;;  %v593_v19 = vlaneseq }
  0x4c   : > { %1570 = vset.pattern.permute.xlu1 %v1747_v3  ;;  %1569 = vset.pattern.permute.xlu0 %v1747_v3  ;;  %v415_v4 = vld [vmem:[%s2258_s3 + $0x10] sm:$0xff]  ;;  %v596_v6 = vld [vmem:[%s2255_s0 + $0x8] sm:$0xff]  ;;  %v416_v7 = vld [vmem:[%s2258_s3 + $0x18] sm:$0xff]  ;;  %v1750_v12 = vmov 3   ;;  %v1751_v13 = vmov 6   ;;  %v1752_v14 = vmov 4  }
  0x4d   : > { %606 = vperm.xlu1 %1570, %v597_v1   ;;  %600 = vperm.xlu0 %1569, %v595_v2   ;;  %v414_v10 = vld [vmem:[%s2258_s3 + $0x8] sm:$0xff]  ;;  %v413_v11 = vld [vmem:[%s2258_s3] sm:$0xff]  ;;  %v1753_v15 = vmov 5   ;;  %v594_v21 = vand.u32 127, %v593_v19  ;;  %v1754_v24 = vmov 0.0   ;;  %vm622_vm2 = vcmask 130048  }
  0x4e   : > { %1571 = vset.pattern.permute.xlu2 %v1747_v3  ;;  %v1981_v50 = vld [vmem:[%s1931_s24] sm:$0x7f]  ;;  %v1997_v56 = vld [vmem:[%s2260_s5 + $0x8] sm:$0xff]  ;;  %vm823_vm5 = vcmask 7168   ;;  %vm664_vm8 = vcmask 261120   ;;  %s1231_s14 = sshll.u32 %s2264_s9, 4  ;;  %s1232_s14 = int_to_ptr.hbm [resolvable:$true] %s1231_s14 }
  0x4f   : > { %430 = vperm.xlu2 %1571, %v415_v4   ;;  %v438_v52 = vperm.slane %v1981_v50, 0  ;;  %v459_v53 = vperm.slane %v1981_v50, 1  ;;  %v1992_v55 = vld [vmem:[%s2260_s5] sm:$0xff]  ;;  %v825_v59 = vsel %vm823_vm5, %v1997_v56, 0.0  ;;  %v484_v62 = vperm.slane %v1981_v50, 2  ;;  %p1519_p7 = scmp.eq.s32.totalorder %s1827_s13, 4 }
  0x50   : > { %v411_v16 = vld [vmem:[#allocation7] sm:$0xff]  ;;  %v824_v58 = vsel %vm823_vm5, %v1992_v55, 0.0  ;;  %s1756_s11 = smov 128   ;;  %s1757_s17 = smov 8  }
  0x51   : > { %v412_v17 = vld [vmem:[#allocation7 + $0x8] sm:$0xff]  ;;  %v682_v57 = vld [vmem:[%s2259_s4] sm:$0xff]  ;;  %v826_v60 = vadd.f32 %v825_v59, %v824_v58 }
  0x52   : > { %v621_v18 = vpack.c.bf16 %v412_v17, %v411_v16 }
  0x53   : > { %v827_v2 = vrot.slane %v826_v60, 4 }
  0x54   : > { %636 = vmatpush.bf16.msra.mxu0 %v621_v18 }
  0x55   : > { %609 = vperm.xlu1 %1570, %v598_v5   ;;  %603 = vperm.xlu0 %1569, %v596_v6  }
  0x57   : > { %435 = vperm.xlu2 %1571, %v416_v7  }
  0x5d   : > { %1573 = vset.pattern.permute.xlu1 %v1748_v8  ;;  %1572 = vset.pattern.permute.xlu0 %v1748_v8 }
  0x5e   : > { %456 = vperm.xlu1 %1573, %v416_v7   ;;  %452 = vperm.xlu0 %1572, %v415_v4  }
  0x5f   : > { %1574 = vset.pattern.permute.xlu2 %v1749_v9 }
  0x60   : > { %477 = vperm.xlu2 %1574, %v415_v4  }
  0x66   : > { %1575 = vset.pattern.permute.xlu1 %v1749_v9  ;;  %1577 = vset.pattern.permute.xlu0 %v1747_v3 }
  0x67   : > { %481 = vperm.xlu1 %1575, %v416_v7   ;;  %425 = vperm.xlu0 %1577, %v414_v10  }
  0x68   : > { %1576 = vset.pattern.permute.xlu2 %v1747_v3 }
  0x69   : > { %420 = vperm.xlu2 %1576, %v413_v11  }
  0x6f   : > { %1578 = vset.pattern.permute.xlu1 %v1748_v8  ;;  %1582 = vset.pattern.permute.xlu0 %v1749_v9 }
  0x70   : > { %444 = vperm.xlu1 %1578, %v413_v11   ;;  %469 = vperm.xlu0 %1582, %v413_v11  }
  0x71   : > { %1579 = vset.pattern.permute.xlu2 %v1748_v8 }
  0x72   : > { %448 = vperm.xlu2 %1579, %v414_v10  }
  0x78   : > { %1580 = vset.pattern.permute.xlu1 %v1750_v12  ;;  %1587 = vset.pattern.permute.xlu0 %v1750_v12 }
  0x79   : > { %502 = vperm.xlu1 %1580, %v415_v4   ;;  %498 = vperm.xlu0 %1587, %v414_v10  }
  0x7a   : > { %1581 = vset.pattern.permute.xlu2 %v1750_v12 }
  0x7b   : > { %506 = vperm.xlu2 %1581, %v416_v7  }
  0x81   : > { %1583 = vset.pattern.permute.xlu1 %v1749_v9  ;;  %1592 = vset.pattern.permute.xlu0 %v1751_v13 }
  0x82   : > { %473 = vperm.xlu1 %1583, %v414_v10   ;;  %577 = vperm.xlu0 %1592, %v415_v4  }
  0x83   : > { %1584 = vset.pattern.permute.xlu2 %v1752_v14 }
  0x84   : > { %527 = vperm.xlu2 %1584, %v415_v4  }
  0x8a   : > { %1585 = vset.pattern.permute.xlu1 %v1752_v14  ;;  %573 = vperm.xlu0 %1592, %v414_v10  }
  0x8b   : > { %531 = vperm.xlu1 %1585, %v416_v7  }
  0x8c   : > { %1586 = vset.pattern.permute.xlu2 %v1750_v12 }
  0x8d   : > { %494 = vperm.xlu2 %1586, %v413_v11  }
  0x92   : > { %1599 = vset.pattern.permute.xlu0 %v1747_v3 }
  0x93   : > { %1588 = vset.pattern.permute.xlu1 %v1753_v15 }
  0x94   : > { %552 = vperm.xlu1 %1588, %v415_v4  }
  0x95   : > { %1589 = vset.pattern.permute.xlu2 %v1753_v15 }
  0x96   : > { %556 = vperm.xlu2 %1589, %v416_v7  }
  0x9c   : > { %1590 = vset.pattern.permute.xlu1 %v1752_v14 }
  0x9d   : > { %519 = vperm.xlu1 %1590, %v413_v11  }
  0x9e   : > { %1591 = vset.pattern.permute.xlu2 %v1752_v14 }
  0x9f   : > { %523 = vperm.xlu2 %1591, %v414_v10  }
  0xa5   : > { %1593 = vset.pattern.permute.xlu1 %v1751_v13 }
  0xa6   : > { %581 = vperm.xlu1 %1593, %v416_v7  }
  0xa7   : > { %1594 = vset.pattern.permute.xlu2 %v1753_v15 }
  0xa8   : > { %544 = vperm.xlu2 %1594, %v413_v11  }
  0xa9   : > { %v431_v32 = vpop.permute.xlu2 %430 }
  0xaa   : > { %v441_v61 = vmul.f32 %v438_v52, %v431_v32 }
  0xae   : > { %1595 = vset.pattern.permute.xlu1 %v1753_v15 }
  0xaf   : > { %548 = vperm.xlu1 %1595, %v414_v10   ;;  %v828_v10 = vadd.f32 %v827_v2, %v826_v60 }
  0xb0   : > { %1596 = vset.pattern.permute.xlu2 %v1751_v13  ;;  %v509_v13 = vperm.slane %v1981_v50, 3 }
  0xb1   : > { %569 = vperm.xlu2 %1596, %v413_v11   ;;  %v436_v33 = vpop.permute.xlu2 %435  ;;  %v829_v14 = vrot.slane %v828_v10, 2 }
  0xb7   : > { %1597 = vset.pattern.permute.xlu1 %v1747_v3 }
  0xb8   : > { %686 = vperm.xlu1 %1597, %v682_v57   ;;  %v584_v57 = vperm.slane %v1981_v50, 6 }
  0xb9   : > { %1598 = vset.pattern.permute.xlu2 %v1747_v3  ;;  %v442_v3 = vmul.f32 %v438_v52, %v436_v33 }
  0xba   : > { %v478_v35 = vpop.permute.xlu2 %477 }
  0xbb   : > { %v487_v11 = vmul.f32 %v484_v62, %v478_v35 }
  0xbf   : > { %v601_v20 = vpop.permute.xlu0 %600  ;;  %v607_v22 = vpop.permute.xlu1 %606 }
  0xc0   : > { %vm611_vm0 = vcmp.eq.s32.totalorder %v594_v21, %v601_v20  ;;  %vm613_vm3 = vcmp.eq.s32.totalorder %v594_v21, %v607_v22  ;;  %836 = vperm.xlu1 %1597, %v1992_v55  }
  0xc1   : > { %v615_v25 = vsel %vm611_vm0, 1.0, %v1754_v24  ;;  %v617_v29 = vsel %vm613_vm3, 1.0, %v1754_v24 }
  0xc3   : > { %v421_v37 = vpop.permute.xlu2 %420 }
  0xc4   : > { %v439_v7 = vmul.f32 %v438_v52, %v421_v37 }
  0xc7   : > { %v604_v23 = vpop.permute.xlu0 %603  ;;  %v610_v28 = vpop.permute.xlu1 %609 }
  0xc8   : > { %vm612_vm1 = vcmp.eq.s32.totalorder %v594_v21, %v604_v23  ;;  %vm614_vm4 = vcmp.eq.s32.totalorder %v594_v21, %v610_v28  ;;  %v830_v23 = vadd.f32 %v829_v14, %v828_v10  ;;  %v653_v10 = vshrl.u32 %v593_v19, 7 }
  0xc9   : > { %v616_v26 = vsel %vm612_vm1, 1.0, %v1754_v24  ;;  %v618_v30 = vsel %vm614_vm4, 1.0, %v1754_v24 }
  0xca   : > { %v619_v27 = vpack.c.bf16 %v616_v26, %v615_v25  ;;  %v620_v31 = vpack.c.bf16 %v618_v30, %v617_v29  ;;  %v831_v28 = vrot.slane %v830_v23, 1  ;;  %v683_v29 = vld [vmem:[%s2259_s4 + $0x8] sm:$0xff] }
  0xcb   : > { %691 = vperm.xlu2 %1598, %v683_v29  }
  0xcc   : > { %1334 = vmatmul.msk.bf16.vlgmr.msra.gmra.mxu0 %vm622_vm2, %v619_v27  ;;  %v449_v39 = vpop.permute.xlu2 %448  ;;  %v534_v27 = vperm.slane %v1981_v50, 4 }
  0xcd   : > { %v461_v5 = vmul.f32 %v459_v53, %v449_v39  ;;  %v832_v39 = vadd.f32 %v831_v28, %v830_v23 }
  0xcf   : > { %878 = vperm.xlu0 %1599, %v832_v39  }
  0xd0   : > { %v457_v34 = vpop.permute.xlu1 %456  ;;  %v453_v43 = vpop.permute.xlu0 %452 }
  0xd1   : > { %v462_v63 = vmul.f32 %v459_v53, %v453_v43  ;;  %v463_v4 = vmul.f32 %v459_v53, %v457_v34  ;;  %v559_v43 = vperm.slane %v1981_v50, 5  ;;  %v957_v50 = vsub.f32 1.0, %v1997_v56 }
  0xd3   : > { %v466_v12 = vadd.f32 %v462_v63, %v441_v61  ;;  %v467_v15 = vadd.f32 %v463_v4, %v442_v3  ;;  %841 = vperm.xlu2 %1598, %v1997_v56  }
  0xd5   : > { %v507_v41 = vpop.permute.xlu2 %506  ;;  %v491_v25 = vadd.f32 %v487_v11, %v466_v12 }
  0xd6   : > { %v513_v30 = vmul.f32 %v509_v13, %v507_v41 }
  0xd9   : > { %v482_v36 = vpop.permute.xlu1 %481  ;;  %v426_v46 = vpop.permute.xlu0 %425 }
  0xda   : > { %v440_v6 = vmul.f32 %v438_v52, %v426_v46  ;;  %v488_v18 = vmul.f32 %v484_v62, %v482_v36  ;;  %v833_v46 = vsub.f32 16.0, %v832_v39 }
  0xdc   : > { %1335 = vmatmul.msk.bf16.gmra.mxu0 %vm622_vm2, %v620_v31  ;;  %v465_v16 = vadd.f32 %v461_v5, %v440_v6  ;;  %v492_v34 = vadd.f32 %v488_v18, %v467_v15  ;;  %901 = vperm.xlu1 %1597, %v833_v46   ;;  %v1600_v18 = vld [vmem:[%s2256_s1] ss:$0 sm:$0xff]  ;;  %v1379_v46 = vld [vmem:[%s1914_s15 + $0x50] sm:$0xf] }
  0xdd   : > { %vm657_vm6 = vcmp.eq.s32.totalorder %v653_v10, %v1600_v18 }
  0xde   : > { %v1974_v44 = vpop.permute.xlu2 %527  ;;  %v517_v41 = vadd.f32 %v513_v30, %v492_v34  ;;  %v659_v29 = vsel %vm657_vm6, 1.0, %v1754_v24  ;;  %v1485_v34 = vld [vmem:[%s1914_s15 + $0x74] sm:$0xf] }
  0xe2   : > { %v445_v38 = vpop.permute.xlu1 %444  ;;  %v470_v49 = vpop.permute.xlu0 %469 }
  0xe3   : > { %v460_v8 = vmul.f32 %v459_v53, %v445_v38  ;;  %v485_v21 = vmul.f32 %v484_v62, %v470_v49 }
  0xe4   : > { %965 = vperm.xlu1 %1597, %v957_v50  }
  0xe5   : > { %v464_v20 = vadd.f32 %v460_v8, %v439_v7 }
  0xe7   : > { %v495_v47 = vpop.permute.xlu2 %494  ;;  %v489_v35 = vadd.f32 %v485_v21, %v464_v20 }
  0xe8   : > { %v510_v36 = vmul.f32 %v509_v13, %v495_v47 }
  0xea   : > { %v514_v53 = vadd.f32 %v510_v36, %v489_v35  ;;  %v1397_v36 = vld [vmem:[%s1914_s15 + $0x78] sm:$0xf0] }
  0xeb   : > { %v503_v40 = vpop.permute.xlu1 %502  ;;  %v499_v0 = vpop.permute.xlu0 %498 }
  0xec   : > { %v512_v26 = vmul.f32 %v509_v13, %v503_v40  ;;  %v511_v32 = vmul.f32 %v509_v13, %v499_v0  ;;  %v537_v40 = vmul.f32 %v534_v27, %v1974_v44 }
  0xf0   : > { %v1983_v51 = vpop.permute.xlu2 %556 }
  0xf1   : > { %v563_v63 = vmul.f32 %v559_v43, %v1983_v51 }
  0xf4   : > { %v474_v42 = vpop.permute.xlu1 %473  ;;  %v578_v33 = vpop.permute.xlu0 %577 }
  0xf5   : > { %v486_v17 = vmul.f32 %v484_v62, %v474_v42  ;;  %v516_v42 = vadd.f32 %v512_v26, %v491_v25  ;;  %v587_v0 = vmul.f32 %v584_v57, %v578_v33  ;;  %v1486_v33 = vld [vmem:[%s1914_s15 + $0x74] sm:$0xf0] }
  0xf7   : > { %v490_v31 = vadd.f32 %v486_v17, %v465_v16  ;;  %v541_v59 = vadd.f32 %v537_v40, %v516_v42  ;;  %v654_v17 = vadd.s32 8, %v653_v10  ;;  %v1389_v42 = vld [vmem:[%s1914_s15 + $0x68] sm:$0xf0] }
  0xf9   : > { %v524_v1 = vpop.permute.xlu2 %523  ;;  %v515_v49 = vadd.f32 %v511_v32, %v490_v31  ;;  %vm658_vm7 = vcmp.eq.s32.totalorder %v654_v17, %v1600_v18  ;;  %v1395_v32 = vld [vmem:[%s1914_s15 + $0x70] sm:$0xf]  ;;  %v956_v17 = vsub.f32 1.0, %v1992_v55 }
  0xfa   : > { %v536_v52 = vmul.f32 %v534_v27, %v524_v1  ;;  %v1396_v35 = vor.u32 %v1486_v33, %v1395_v32 }
  0xfb   : > { %960 = vperm.xlu0 %1599, %v956_v17  }
  0xfc   : > { %v540_v44 = vadd.f32 %v536_v52, %v515_v49  ;;  %v574_v1 = vpop.permute.xlu0 %573  ;;  %793 = vmatpush.bf16.msra.mxu2 %v1396_v35  ;;  %v1482_v49 = vld [vmem:[%s1914_s15 + $0x54] sm:$0xf0]  ;;  %v1481_v52 = vld [vmem:[%s1914_s15 + $0x54] sm:$0xf] }
  0xfd   : > { %v1976_v45 = vpop.permute.xlu1 %531  ;;  %v586_v8 = vmul.f32 %v584_v57, %v574_v1 }
  0xfe   : > { %v538_v47 = vmul.f32 %v534_v27, %v1976_v45 }
 0x100   : > { %v542_v3 = vadd.f32 %v538_v47, %v517_v41  ;;  %v1380_v41 = vor.u32 %v1482_v49, %v1379_v46  ;;  %v1479_v47 = vld [vmem:[%s1914_s15 + $0x44] sm:$0xf] }
 0x102   : > { %v545_v37 = vpop.permute.xlu2 %544  ;;  %v567_v11 = vadd.f32 %v563_v63, %v542_v3  ;;  %v1478_v63 = vld [vmem:[%s1914_s15 + $0x34] sm:$0xf0]  ;;  %v1355_v3 = vld [vmem:[%s1914_s15 + $0x20] sm:$0xf] }
 0x103   : > { %v560_v6 = vmul.f32 %v559_v43, %v545_v37  ;;  %v1387_v37 = vld [vmem:[%s1914_s15 + $0x60] sm:$0xf] }
 0x106   : > { %v1978_v48 = vpop.permute.xlu1 %552 }
 0x107   : > { %v562_v60 = vmul.f32 %v559_v43, %v1978_v48 }
 0x109   : > { %v566_v4 = vadd.f32 %v562_v60, %v541_v59  ;;  %v1373_v60 = vld [vmem:[%s1914_s15 + $0x48] sm:$0xf0] }
 0x10b   : > { %v570_v45 = vpop.permute.xlu2 %569  ;;  %v591_v13 = vadd.f32 %v587_v0, %v566_v4  ;;  %v1477_v0 = vld [vmem:[%s1914_s15 + $0x34] sm:$0xf]  ;;  %v1476_v4 = vld [vmem:[%s1914_s15 + $0x24] sm:$0xf0] }
 0x10c   : > { %v585_v51 = vmul.f32 %v584_v57, %v570_v45  ;;  %v1357_v45 = vld [vmem:[%s1914_s15 + $0x28] sm:$0xf0] }
 0x10f   : > { %v1987_v54 = vpop.permute.xlu1 %519 }
 0x110   : > { %v535_v61 = vmul.f32 %v534_v27, %v1987_v54  ;;  %v990_v54 = vadd.f32 1.0, %v832_v39  ;;  %v1400_v39 = vor.u32 %v1485_v34, %v1397_v36 }
 0x112   : > { %v539_v5 = vadd.f32 %v535_v61, %v514_v53  ;;  %993 = vperm.xlu2 %1598, %v990_v54   ;;  %807 = vmatpush.bf16.msra.mxu3 %v1400_v39  ;;  %v1381_v53 = vld [vmem:[%s1914_s15 + $0x58] sm:$0xf0]  ;;  %v1473_v54 = vld [vmem:[%s1914_s15 + $0x14] sm:$0xf] }
 0x113   : > { %v1384_v59 = vor.u32 %v1481_v52, %v1381_v53 }
 0x114   : > { %v564_v12 = vadd.f32 %v560_v6, %v539_v5  ;;  %v1475_v5 = vld [vmem:[%s1914_s15 + $0x24] sm:$0xf]  ;;  %v1356_v6 = vor.u32 %v1476_v4, %v1355_v3 }
 0x116   : > { %v589_v20 = vadd.f32 %v585_v51, %v564_v12  ;;  %v1339_v51 = vld [vmem:[%s1914_s15] sm:$0xf] }
 0x118   : > { %v582_v22 = vpop.permute.xlu1 %581 }
 0x119   : > { %v588_v7 = vmul.f32 %v584_v57, %v582_v22  ;;  %v1371_v57 = vld [vmem:[%s1914_s15 + $0x40] sm:$0xf] }
 0x11b   : > { %v592_v16 = vadd.f32 %v588_v7, %v567_v11  ;;  %v1360_v7 = vor.u32 %v1475_v5, %v1357_v45  ;;  %v1349_v11 = vld [vmem:[%s1914_s15 + $0x18] sm:$0xf0] }
 0x11c   : > { %v1352_v12 = vor.u32 %v1473_v54, %v1349_v11 }
 0x121   : > { %v549_v58 = vpop.permute.xlu1 %548 }
 0x122   : > { %v561_v62 = vmul.f32 %v559_v43, %v549_v58  ;;  %v1480_v58 = vld [vmem:[%s1914_s15 + $0x44] sm:$0xf0] }
 0x123   : > { %v1372_v61 = vor.u32 %v1480_v58, %v1371_v57 }
 0x124   : > { %v565_v48 = vadd.f32 %v561_v62, %v540_v44  ;;  %v1376_v44 = vor.u32 %v1479_v47, %v1373_v60  ;;  %v1363_v62 = vld [vmem:[%s1914_s15 + $0x30] sm:$0xf] }
 0x125   : > { %v1364_v1 = vor.u32 %v1478_v63, %v1363_v62 }
 0x126   : > { %v590_v14 = vadd.f32 %v586_v8, %v565_v48  ;;  %v1347_v48 = vld [vmem:[%s1914_s15 + $0x10] sm:$0xf]  ;;  %v1474_v8 = vld [vmem:[%s1914_s15 + $0x14] sm:$0xf0] }
 0x127   : > { %v1348_v10 = vor.u32 %v1474_v8, %v1347_v48 }
 0x149   : > { %v2005_v9 = vpop.f32.mrf.mxu0 }
 0x14a   : > { %v639_v19 = vadd.f32 %v2005_v9, %v589_v20  ;;  %v660_v9 = vsel %vm658_vm7, 1.0, %v1754_v24  ;;  %v1483_v24 = vld [vmem:[%s1914_s15 + $0x64] sm:$0xf]  ;;  %v692_v20 = vpop.permute.xlu2 %691 }
 0x14b   : > { %v661_v31 = vpack.c.bf16 %v660_v9, %v659_v29  ;;  %v1392_v43 = vor.u32 %v1483_v24, %v1389_v42  ;;  %v2068_v29 = vpop.permute.xlu0 %878 }
 0x14c   : > { %v648_v28 = vmax.f32 %v639_v19, 0.0  ;;  %vm886_vm11 = vweird.f32 %v2068_v29  ;;  %v890_v5 = vand.u32 2147483647, %v2068_v29 }
 0x14d   : > { %808 = vmatpush.bf16.msra.mxu3 %v1392_v43 }
 0x14e   : > { %vm2150_vm2 = vcmp.eq.f32.partialorder %v890_v5, 8.507059e+37 }
 0x151   : > { %v640_v38 = vpop.f32.mrf.mxu0  ;;  %809 = vmatpush.bf16.msra.mxu3 %v1384_v59 }
 0x152   : > { %v641_v21 = vadd.f32 %v640_v38, %v590_v14  ;;  %v1484_v38 = vld [vmem:[%s1914_s15 + $0x64] sm:$0xf0]  ;;  %v1471_v14 = vld [vmem:[%s1914_s15 + $0x4] sm:$0xf] }
 0x153   : > { %v1388_v40 = vor.u32 %v1484_v38, %v1387_v37 }
 0x154   : > { %v649_v26 = vmax.f32 %v641_v21, 0.0  ;;  %v687_v21 = vpop.permute.xlu1 %686 }
 0x155   : > { %794 = vmatpush.bf16.msra.mxu2 %v1388_v40  ;;  %810 = vmatpush.bf16.msra.mxu3 %v1376_v44 }
 0x156   : > { %v662_v30 = vpack.c.bf16 %v649_v26, %v648_v28  ;;  %v2062_v26 = vpop.permute.xlu2 %841 }
 0x159   : > { %v643_v2 = vpop.f32.mrf.mxu0  ;;  %795 = vmatpush.bf16.msra.mxu2 %v1380_v41 }
 0x15a   : > { %v644_v15 = vadd.f32 %v643_v2, %v591_v13  ;;  %v1365_v2 = vld [vmem:[%s1914_s15 + $0x38] sm:$0xf0]  ;;  %v1472_v13 = vld [vmem:[%s1914_s15 + $0x4] sm:$0xf0] }
 0x15b   : > { %v1368_v50 = vor.u32 %v1477_v0, %v1365_v2 }
 0x15c   : > { %v650_v23 = vmax.f32 %v644_v15, 0.0  ;;  %v1340_v15 = vor.u32 %v1472_v13, %v1339_v51 }
 0x15d   : > { %796 = vmatpush.bf16.msra.mxu2 %v1372_v61  ;;  %811 = vmatpush.bf16.msra.mxu3 %v1368_v50 }
 0x161   : > { %v645_v56 = vpop.f32.mrf.mxu0  ;;  %797 = vmatpush.bf16.msra.mxu2 %v1364_v1  ;;  %812 = vmatpush.bf16.msra.mxu3 %v1360_v7 }
 0x162   : > { %v646_v22 = vadd.f32 %v645_v56, %v592_v16  ;;  %v1341_v16 = vld [vmem:[%s1914_s15 + $0x8] sm:$0xf0]  ;;  %s1755_s15 = smov [#allocation7]  }
 0x163   : > { %v1344_v56 = vor.u32 %v1471_v14, %v1341_v16 }
 0x164   : > { %v651_v25 = vmax.f32 %v646_v22, 0.0 }
 0x165   : > { %798 = vmatpush.bf16.msra.mxu2 %v1356_v6  ;;  %813 = vmatpush.bf16.msra.mxu3 %v1352_v12  ;;  %v892_v6 = vand.u32 2147483648, %v2068_v29  ;;  %v1499_v12 = vld [vmem:[%s1920_s26 + $0x60] sm:$0xff] }
 0x166   : > { %v663_v27 = vpack.c.bf16 %v651_v25, %v650_v23 }
 0x168   : > { %674 = vmatpush.bf16.msra.mxu1 %v663_v27  ;;  %v2064_v27 = vpop.permute.xlu1 %836 }
 0x169   : > { %799 = vmatpush.bf16.msra.mxu2 %v1348_v10  ;;  %814 = vmatpush.bf16.msra.mxu3 %v1344_v56 }
 0x16c   : > { %675 = vmatpush.bf16.msra.mxu1 %v662_v30  ;;  %v2066_v28 = vpop.permute.xlu2 %993 }
 0x16d   : > { %800 = vmatpush.bf16.msra.mxu2 %v1340_v15  ;;  %1601 = vrcp.f32 %v2066_v28  ;;  %vm1001_vm9 = vweird.f32 %v2066_v28  ;;  %v1005_v17 = vand.u32 2147483647, %v2066_v28 }
 0x16e   : > { %1603 = vrcp.f32 %v2068_v29 }
 0x16f   : > { %1336 = vmatmul.msk.bf16.vlgmr.msra.gmra.mxu1 %vm664_vm8, %v661_v31  ;;  %vm2166_vm4 = vcmp.eq.f32.partialorder %v1005_v17, 8.507059e+37 }
 0x170   : > { %v2070_v9 = vpop.permute.xlu1 %901 }
 0x171   : > { %1605 = vrcp.f32 %v2070_v9  ;;  %vm909_vm10 = vweird.f32 %v2070_v9  ;;  %v913_v10 = vand.u32 2147483647, %v2070_v9  ;;  %v915_v11 = vand.u32 2147483648, %v2070_v9 }
 0x173   : > { %v2075_v55 = vpop.eup %1601  ;;  %vm2157_vm3 = vcmp.eq.f32.partialorder %v913_v10, 8.507059e+37 }
 0x174   : > { %v2081_v32 = vpop.eup %1603  ;;  %v997_v34 = vmul.f32 %v2075_v55, %v2066_v28  ;;  %vm1002_vm14 = vweird.f32 %v2075_v55 }
 0x175   : > { %v882_v35 = vmul.f32 %v2081_v32, %v2068_v29  ;;  %vm887_vm12 = vweird.f32 %v2081_v32  ;;  %vm2143_vm1 = vmor %vm1001_vm9, %vm1002_vm14 }
 0x176   : > { %v998_v37 = vsub.f32 1.0, %v997_v34  ;;  %vm2126_vm15 = vmor %vm886_vm11, %vm887_vm12 }
 0x177   : > { %v2083_v33 = vpop.eup %1605  ;;  %v883_v38 = vsub.f32 1.0, %v882_v35 }
 0x178   : > { %v905_v36 = vmul.f32 %v2083_v33, %v2070_v9  ;;  %v999_v47 = vmul.f32 %v2075_v55, %v998_v37  ;;  %vm910_vm13 = vweird.f32 %v2083_v33  ;;  %v1493_v37 = vld [vmem:[%s1920_s26 + $0x30] sm:$0xff]  ;;  %v966_v51 = vpop.permute.xlu1 %965 }
 0x179   : > { %v884_v60 = vmul.f32 %v2081_v32, %v883_v38  ;;  %vm2132_vm0 = vmor %vm909_vm10, %vm910_vm13  ;;  %v1501_v38 = vld [vmem:[%s1920_s26 + $0x70] sm:$0xff] }
 0x17a   : > { %v906_v41 = vsub.f32 1.0, %v905_v36  ;;  %v1000_v56 = vadd.f32 %v2075_v55, %v999_v47  ;;  %v916_v36 = vor.u32 1.1754944e-38, %v915_v11 }
 0x17b   : > { %v885_v4 = vadd.f32 %v2081_v32, %v884_v60 }
 0x17c   : > { %v907_v0 = vmul.f32 %v2083_v33, %v906_v41 }
 0x17e   : > { %v908_v54 = vadd.f32 %v2083_v33, %v907_v0 }
 0x180   : > { %v912_v35 = vsel %vm2132_vm0, %v2083_v33, %v908_v54 }
 0x1ec   : > { %v677_v18 = vpop.f32.mrf.mxu1 }
 0x1ed   : > { %v694_v19 = vmul.f32 %v687_v21, %v677_v18  ;;  %v1007_v18 = vand.u32 2147483648, %v2066_v28  ;;  %v1494_v21 = vld [vmem:[%s1920_s26 + $0x38] sm:$0xff] }
 0x1ee   : > { %1194 = vmatpush.bf16.msrb.mxu0 %v1494_v21 }
 0x1f2   : > { %1195 = vmatpush.bf16.msrb.mxu0 %v1493_v37 }
 0x1f4   : > { %v679_v22 = vpop.f32.mrf.mxu1 }
 0x1f5   : > { %v695_v23 = vmul.f32 %v692_v20, %v679_v22  ;;  %v893_v20 = vor.u32 1.1754944e-38, %v892_v6  ;;  %v1502_v22 = vld [vmem:[%s1920_s26 + $0x78] sm:$0xff] }
 0x1f6   : > { %1208 = vmatpush.bf16.msrb.mxu1 %v1502_v22 }
 0x1f7   : > { %v696_v25 = vpack.c.bf16 %v695_v23, %v694_v19 }
 0x1f9   : > { %801 = vmatmul.bf16.vlgmr.msra.gmra.mxu2 %v696_v25  ;;  %815 = vmatmul.bf16.vlgmr.msra.gmra.mxu3 %v696_v25  ;;  %v889_v25 = vsel %vm2126_vm15, %v2081_v32, %v885_v4 }
 0x1fa   : > { %1209 = vmatpush.bf16.msrb.mxu1 %v1501_v38 }
 0x27c   : > { %v2077_v30 = vpop.f32.mrf.mxu2  ;;  %v2079_v31 = vpop.f32.mrf.mxu3 }
 0x27d   : > { %v844_v39 = vmul.f32 %v2064_v27, %v2077_v30  ;;  %v845_v24 = vmul.f32 %v2064_v27, %v2079_v31 }
 0x284   : > { %v2095_v42 = vpop.f32.mrf.mxu2  ;;  %v2097_v40 = vpop.f32.mrf.mxu3 }
 0x285   : > { %v846_v43 = vmul.f32 %v2062_v26, %v2095_v42  ;;  %v862_v46 = vadd.f32 %v2095_v42, %v2077_v30  ;;  %v847_v49 = vmul.f32 %v2062_v26, %v2097_v40  ;;  %v869_v52 = vadd.f32 %v2097_v40, %v2079_v31 }
 0x287   : > { %v848_v53 = vadd.f32 %v846_v43, %v844_v39  ;;  %v863_v57 = vrot.slane %v862_v46, 4  ;;  %v855_v58 = vadd.f32 %v847_v49, %v845_v24  ;;  %v870_v59 = vrot.slane %v869_v52, 4 }
 0x288   : > { %v1008_v49 = vor.u32 1.1754944e-38, %v1007_v18 }
 0x289   : > { %v849_v61 = vrot.slane %v848_v53, 4  ;;  %v864_v44 = vadd.f32 %v863_v57, %v862_v46  ;;  %v856_v62 = vrot.slane %v855_v58, 4  ;;  %v871_v63 = vadd.f32 %v870_v59, %v869_v52 }
 0x28a   : > { %v1004_v46 = vsel %vm2143_vm1, %v2075_v55, %v1000_v56  ;;  %v2172_v52 = vsel %vm2150_vm2, %v893_v20, %v889_v25  ;;  %v2178_v59 = vsel %vm2157_vm3, %v916_v36, %v912_v35  ;;  %v1492_v55 = vld [vmem:[%s1920_s26 + $0x28] sm:$0xff]  ;;  %v1490_v25 = vld [vmem:[%s1920_s26 + $0x18] sm:$0xff] }
 0x28b   : > { %v850_v1 = vadd.f32 %v849_v61, %v848_v53  ;;  %v865_v2 = vrot.slane %v864_v44, 2  ;;  %v857_v50 = vadd.f32 %v856_v62, %v855_v58  ;;  %v872_v3 = vrot.slane %v871_v63, 2  ;;  %v1500_v62 = vld [vmem:[%s1920_s26 + $0x68] sm:$0xff]  ;;  %1196 = vmatpush.bf16.msrb.mxu0 %v1492_v55 }
 0x28c   : > { %1210 = vmatpush.bf16.msrb.mxu1 %v1500_v62 }
 0x28d   : > { %v851_v45 = vrot.slane %v850_v1, 2  ;;  %v866_v7 = vadd.f32 %v865_v2, %v864_v44  ;;  %v858_v48 = vrot.slane %v857_v50, 2  ;;  %v873_v8 = vadd.f32 %v872_v3, %v871_v63 }
 0x28e   : > { %v2188_v63 = vsel %vm2166_vm4, %v1008_v49, %v1004_v46 }
 0x28f   : > { %v852_v13 = vadd.f32 %v851_v45, %v850_v1  ;;  %v867_v14 = vrot.slane %v866_v7, 1  ;;  %v859_v15 = vadd.f32 %v858_v48, %v857_v50  ;;  %v874_v16 = vrot.slane %v873_v8, 1  ;;  %v1491_v48 = vld [vmem:[%s1920_s26 + $0x20] sm:$0xff] }
 0x290   : > { %1197 = vmatpush.bf16.msrb.mxu0 %v1491_v48  ;;  %1211 = vmatpush.bf16.msrb.mxu1 %v1499_v12  ;;  %v1495_v12 = vld [vmem:[%s1920_s26 + $0x40] sm:$0xff] }
 0x291   : > { %v853_v23 = vrot.slane %v852_v13, 1  ;;  %v860_v34 = vrot.slane %v859_v15, 1  ;;  %v868_v39 = vadd.f32 %v867_v14, %v866_v7  ;;  %v875_v43 = vadd.f32 %v874_v16, %v873_v8 }
 0x293   : > { %v854_v32 = vadd.f32 %v853_v23, %v852_v13  ;;  %v861_v24 = vadd.f32 %v860_v34, %v859_v15  ;;  %v961_v13 = vpop.permute.xlu0 %960 }
 0x294   : > { %1198 = vmatpush.bf16.msrb.mxu0 %v1490_v25 }
 0x295   : > { %v895_v41 = vmul.f32 %v2172_v52, %v854_v32  ;;  %v897_v53 = vsub.f32 %v868_v39, %v854_v32  ;;  %v896_v57 = vmul.f32 %v2172_v52, %v861_v24  ;;  %v898_v58 = vsub.f32 %v875_v43, %v861_v24  ;;  %v1489_v43 = vld [vmem:[%s1920_s26 + $0x10] sm:$0xff] }
 0x297   : > { %v918_v47 = vmul.f32 %v2178_v59, %v897_v53  ;;  %v920_v60 = vsub.f32 %v2077_v30, %v895_v41  ;;  %v922_v61 = vsub.f32 %v2095_v42, %v895_v41  ;;  %v919_v44 = vmul.f32 %v2178_v59, %v898_v58  ;;  %v1497_v53 = vld [vmem:[%s1920_s26 + $0x50] sm:$0xff] }
 0x298   : > { %v921_v0 = vsub.f32 %v2079_v31, %v896_v57  ;;  %v923_v1 = vsub.f32 %v2097_v40, %v896_v57  ;;  %1199 = vmatpush.bf16.msrb.mxu0 %v1489_v43 }
 0x299   : > { %v924_v2 = vsub.f32 %v2077_v30, %v918_v47  ;;  %v926_v50 = vsub.f32 %v2095_v42, %v918_v47  ;;  %v928_v3 = vmul.f32 %v920_v60, %v920_v60  ;;  %v930_v4 = vmul.f32 %v922_v61, %v922_v61 }
 0x29a   : > { %v988_v5 = vsub.f32 %v918_v47, %v895_v41  ;;  %v925_v6 = vsub.f32 %v2079_v31, %v919_v44  ;;  %v927_v45 = vsub.f32 %v2097_v40, %v919_v44  ;;  %v929_v7 = vmul.f32 %v921_v0, %v921_v0 }
 0x29b   : > { %v932_v8 = vmul.f32 %v928_v3, %v2064_v27  ;;  %v934_v54 = vmul.f32 %v930_v4, %v2062_v26  ;;  %v952_v10 = vmul.f32 %v924_v2, %v924_v2  ;;  %v954_v11 = vmul.f32 %v926_v50, %v926_v50 }
 0x29c   : > { %v1010_v14 = vmul.f32 %v2188_v63, %v988_v5  ;;  %v931_v15 = vmul.f32 %v923_v1, %v923_v1  ;;  %v933_v16 = vmul.f32 %v929_v7, %v2064_v27  ;;  %v953_v56 = vmul.f32 %v925_v6, %v925_v6  ;;  %v1498_v27 = vld [vmem:[%s1920_s26 + $0x58] sm:$0xff] }
 0x29d   : > { %v936_v17 = vadd.f32 %v934_v54, %v932_v8  ;;  %v968_v18 = vmul.f32 %v961_v13, %v952_v10  ;;  %v970_v20 = vmul.f32 %v966_v51, %v954_v11  ;;  %v955_v21 = vmul.f32 %v927_v45, %v927_v45  ;;  %1212 = vmatpush.bf16.msrb.mxu1 %v1498_v27  ;;  %v1487_v8 = vld [vmem:[%s1920_s26] sm:$0xff] }
 0x29e   : > { %v935_v22 = vmul.f32 %v931_v15, %v2062_v26  ;;  %v969_v19 = vmul.f32 %v961_v13, %v953_v56  ;;  %v989_v23 = vsub.f32 %v919_v44, %v896_v57  ;;  %v2204_v35 = vadd.f32 %v1010_v14, %v895_v41 }
 0x29f   : > { %v937_v9 = vrot.slane %v936_v17, 4  ;;  %v972_v34 = vadd.f32 %v970_v20, %v968_v18  ;;  %v971_v28 = vmul.f32 %v966_v51, %v955_v21 }
 0x2a0   : > { %v943_v36 = vadd.f32 %v935_v22, %v933_v16  ;;  %v1011_v37 = vmul.f32 %v2188_v63, %v989_v23  ;;  %v1018_v49 = vsub.f32 %v918_v47, %v2204_v35  ;;  %v1496_v47 = vld [vmem:[%s1920_s26 + $0x48] sm:$0xff] }
 0x2a1   : > { %v938_v38 = vadd.f32 %v937_v9, %v936_v17  ;;  %v973_v32 = vrot.slane %v972_v34, 4  ;;  %v979_v39 = vadd.f32 %v971_v28, %v969_v19  ;;  %1213 = vmatpush.bf16.msrb.mxu1 %v1497_v53 }
 0x2a2   : > { %v944_v26 = vrot.slane %v943_v36, 4  ;;  %v2208_v24 = vadd.f32 %v1011_v37, %v896_v57  ;;  %v1488_v57 = vld [vmem:[%s1920_s26 + $0x8] sm:$0xff]  ;;  %v1020_v50 = vmul.f32 %v1018_v49, %v1018_v49  ;;  %s1229_s26 = sshll.u32 %s1755_s15, 4  ;;  %s1230_s26 = int_to_ptr.vmem [resolvable:$true] %s1229_s26 }
 0x2a3   : > { %v939_v46 = vrot.slane %v938_v38, 2  ;;  %v974_v33 = vadd.f32 %v973_v32, %v972_v34  ;;  %v980_v41 = vrot.slane %v979_v39, 4  ;;  %1200 = vmatpush.bf16.msrb.mxu0 %v1488_v57 }
 0x2a4   : > { %v945_v58 = vadd.f32 %v944_v26, %v943_v36  ;;  %v1019_v0 = vsub.f32 %v919_v44, %v2208_v24  ;;  %v1022_v10 = vmul.f32 %v1020_v50, %v2068_v29 }
 0x2a5   : > { %v940_v55 = vadd.f32 %v939_v46, %v938_v38  ;;  %v975_v60 = vrot.slane %v974_v33, 2  ;;  %v981_v61 = vadd.f32 %v980_v41, %v979_v39  ;;  %1214 = vmatpush.bf16.msrb.mxu1 %v1496_v47  ;;  %v1032_v46 = vsub.f32 %v2095_v42, %v2204_v35 }
 0x2a6   : > { %v946_v62 = vrot.slane %v945_v58, 2  ;;  %v1021_v48 = vmul.f32 %v1019_v0, %v1019_v0  ;;  %v1024_v17 = vmul.f32 %v1022_v10, %v2188_v63 }
 0x2a7   : > { %v941_v1 = vrot.slane %v940_v55, 1  ;;  %v976_v2 = vadd.f32 %v975_v60, %v974_v33  ;;  %v982_v3 = vrot.slane %v981_v61, 2  ;;  %1201 = vmatpush.bf16.msrb.mxu0 %v1487_v8  ;;  %v1031_v60 = vsub.f32 %v2079_v31, %v2208_v24 }
 0x2a8   : > { %v947_v4 = vadd.f32 %v946_v62, %v945_v58  ;;  %v1023_v56 = vmul.f32 %v1021_v48, %v2068_v29 }
 0x2a9   : > { %v942_v5 = vadd.f32 %v941_v1, %v940_v55  ;;  %v977_v6 = vrot.slane %v976_v2, 1  ;;  %v983_v45 = vadd.f32 %v982_v3, %v981_v61  ;;  %1215 = vmatpush.bf16.msrb.mxu1 %v1495_v12  ;;  %v1033_v55 = vsub.f32 %v2097_v40, %v2208_v24 }
 0x2aa   : > { %v948_v7 = vrot.slane %v947_v4, 1  ;;  %v1025_v19 = vmul.f32 %v1023_v56, %v2188_v63 }
 0x2ab   : > { %v950_v44 = vmul.f32 %v942_v5, %v2172_v52  ;;  %v978_v54 = vadd.f32 %v977_v6, %v976_v2  ;;  %v984_v11 = vrot.slane %v983_v45, 1 }
 0x2ac   : > { %v949_v51 = vadd.f32 %v948_v7, %v947_v4 }
 0x2ad   : > { %v986_v13 = vmul.f32 %v978_v54, %v2178_v59  ;;  %v1014_v14 = vmul.f32 %v950_v44, %v2068_v29  ;;  %v985_v15 = vadd.f32 %v984_v11, %v983_v45 }
 0x2ae   : > { %v951_v16 = vmul.f32 %v949_v51, %v2172_v52 }
 0x2af   : > { %v987_v18 = vmul.f32 %v985_v15, %v2178_v59  ;;  %v1016_v20 = vadd.f32 %v1014_v14, %v986_v13 }
 0x2b0   : > { %v1015_v21 = vmul.f32 %v951_v16, %v2068_v29 }
 0x2b1   : > { %v1026_v22 = vadd.f32 %v1024_v17, %v1016_v20 }
 0x2b2   : > { %v1017_v23 = vadd.f32 %v1015_v21, %v987_v18 }
 0x2b3   : > { %v1028_v25 = vmul.f32 %v1026_v22, %v2188_v63 }
 0x2b4   : > { %v1027_v9 = vadd.f32 %v1025_v19, %v1017_v23 }
 0x2b5   : > { %v1034_v34 = vadd.f32 1e-05, %v1028_v25 }
 0x2b6   : > { %v1029_v52 = vmul.f32 %v1027_v9, %v2188_v63  ;;  %v1030_v63 = vsub.f32 %v2077_v30, %v2204_v35 }
 0x2b7   : > { %1607 = vrsqrt.f32 %v1034_v34  ;;  %vm1042_vm6 = vweird.f32 %v1034_v34 }
 0x2b8   : > { %v1035_v28 = vadd.f32 1e-05, %v1029_v52 }
 0x2ba   : > { %1609 = vrsqrt.f32 %v1035_v28  ;;  %vm1052_vm9 = vweird.f32 %v1035_v28 }
 0x2bd   : > { %v1608_v27 = vpop.eup %1607 }
 0x2be   : > { %v1037_v36 = vmul.f32 %v1608_v27, %v1034_v34  ;;  %vm1043_vm5 = vweird.f32 %v1608_v27 }
 0x2bf   : > { %vm1044_vm7 = vmor %vm1042_vm6, %vm1043_vm5 }
 0x2c0   : > { %v1610_v59 = vpop.eup %1609  ;;  %v1038_v37 = vmul.f32 %v1608_v27, %v1037_v36 }
 0x2c1   : > { %v1047_v38 = vmul.f32 %v1610_v59, %v1035_v28  ;;  %vm1053_vm8 = vweird.f32 %v1610_v59 }
 0x2c2   : > { %v1039_v32 = vmul.f32 0.5, %v1038_v37  ;;  %vm1054_vm10 = vmor %vm1052_vm9, %vm1053_vm8 }
 0x2c3   : > { %v1048_v29 = vmul.f32 %v1610_v59, %v1047_v38 }
 0x2c4   : > { %v1040_v39 = vsub.f32 1.5, %v1039_v32 }
 0x2c5   : > { %v1049_v26 = vmul.f32 0.5, %v1048_v29 }
 0x2c6   : > { %v1041_v43 = vmul.f32 %v1608_v27, %v1040_v39 }
 0x2c7   : > { %v1050_v33 = vsub.f32 1.5, %v1049_v26 }
 0x2c8   : > { %v1045_v49 = vsel %vm1044_vm7, %v1608_v27, %v1041_v43 }
 0x2c9   : > { %v1056_v41 = vmul.f32 %v1045_v49, %v1030_v63  ;;  %v1058_v53 = vmul.f32 %v1045_v49, %v1032_v46  ;;  %v1051_v58 = vmul.f32 %v1610_v59, %v1050_v33 }
 0x2cb   : > { %v1060_v61 = vmax.f32 %v1056_v41, 0.0  ;;  %v1062_v42 = vmax.f32 %v1058_v53, 0.0  ;;  %v1055_v62 = vsel %vm1054_vm10, %v1610_v59, %v1051_v58 }
 0x2cc   : > { %v1057_v0 = vmul.f32 %v1055_v62, %v1031_v60  ;;  %v1059_v30 = vmul.f32 %v1055_v62, %v1033_v55 }
 0x2cd   : > { %v1064_v35 = vpack.c.bf16 %v1062_v42, %v1060_v61 }
 0x2ce   : > { %v1061_v57 = vmax.f32 %v1057_v0, 0.0  ;;  %v1063_v1 = vmax.f32 %v1059_v30, 0.0 }
 0x2cf   : > { %1202 = vmatmul.bf16.vlgmr.msrb.gmra.mxu0 %v1064_v35 }
 0x2d0   : > { %v1065_v2 = vpack.c.bf16 %v1063_v1, %v1061_v57 }
 0x2d2   : > { %1216 = vmatmul.bf16.vlgmr.msrb.gmra.mxu1 %v1065_v2 }
 0x34c   : > { %v1203_v50 = vpop.f32.mrf.mxu0 }
 0x34f   : > { %v1217_v3 = vpop.f32.mrf.mxu1 }
 0x350   : > { %v1218_v47 = vadd.f32 %v1217_v3, %v1203_v50 }
 0x352   : > { %1222 = vst [vmem:[#allocation7] sm:$0xff] %v1218_v47 }
 0x354   : > { %v1205_v31 = vpop.f32.mrf.mxu0 }
 0x357   : > { %v1219_v40 = vpop.f32.mrf.mxu1 }
 0x358   : > { %v1220_v24 = vadd.f32 %v1219_v40, %v1205_v31 }
 0x35a   : > { %1223 = vst [vmem:[#allocation7 + $0x8] sm:$0xff] %v1220_v24 }
 0x35b   : > { %1508 = dma.vmem_to_hbm [thread:$0]  (%p1519_p7), %s1230_s26, 256, %s1232_s14, [#allocation4], %s1756_s11, %s1756_s11, %s1757_s17  }
 0x35c   : > { %1724 = dma.done.wait (%p1519_p7), [#allocation4], 256  }
 0x35d   : > { %1726 = vsyncadd (%p1519_p7), [#allocation4], 4294967040 }
 0x35e PF: > { %s2293_s12 = sld [smem:[#allocation12_spill]]  ;;  %s2296_s30 = smov %s1733_s10 }
 0x35f   : > { %s2294_s29 = sld [smem:[#allocation11_spill]] }
 0x360   : > { %s2295_s11 = sld [smem:[#allocation13_spill]] }
 0x364   : > { %p23_p2 = scmp.ge.s32.totalorder %s2293_s12, 7  }
 0x365   : > { %s2297_s10 = smov %s2294_s29 }
 0x366   :  { %25 = sbr.rel (!%p23_p2) target bundleno = 8 (0x8), region = 113 }
 0x36b   :  { %1248 = vsyncpa [#allocation3], 1 }
 0x36c   :  { %1250 = vsyncpa [#allocation3 + $0x1], 1 }
 0x36d   :  { %1251 = vsyncpa [#allocation6], 1 }
 0x36e   :  { %1253 = vsyncpa [#allocation6 + $0x1], 1 }
 0x36f   :  { %1254 = vsyncpa [#allocation4], 1 }
 0x370   :  { %1256 = vsyncpa [#allocation4 + $0x1], 1 }

</bundles_post_ra>
